<compile_context>
chip_gen: v6e
topology: v6e:2x2x1
jax: 0.10.0
libtpu: 0.0.40
codegen_flags: <defaults>
</compile_context>

<pallas_src>
import functools

import jax
import jax.numpy as jnp
from jax import lax
from jax.experimental import pallas as pl
from jax.experimental.pallas import tpu as pltpu


def _warp_kernel(flow_ref, src_ref, out_ref, *, H, W):
    # flow_ref: (2, TP)   displacement field for this pixel tile
    # src_ref:  (C, HWp)  full flattened (zero-padded) source, resident over j
    # out_ref:  (C, TP)   warped output columns for this pixel tile
    f32 = jnp.float32
    HWp = src_ref.shape[-1]
    TP = out_ref.shape[-1]

    # Per-pixel (row, col) base coordinates for this tile, derived in-kernel
    # (no `base` HBM input).  Row/col split is done in f32 with an exact
    # off-by-one correction, so it works for any W without integer division.
    p = (pl.program_id(1) * TP
         + lax.broadcasted_iota(jnp.int32, (1, TP), 1)).astype(f32)      # (1, TP)
    yb = jnp.floor(p / W)                     # may be off by one from f32 rounding
    xb = p - yb * W                           # exact (all integers < 2**24)
    yb = jnp.where(xb < 0.0, yb - 1.0, jnp.where(xb >= W, yb + 1.0, yb))
    xb = jnp.where(xb < 0.0, xb + W, jnp.where(xb >= W, xb - W, xb))

    flw = flow_ref[...].astype(f32)           # (2, TP)
    sy = yb + flw[0:1, :]                     # sample row coordinate (1, TP)
    sx = xb + flw[1:2, :]                     # sample col coordinate (1, TP)

    # torch normalize -> grid_sample(align_corners=True) un-normalize.
    # Algebraically the identity; kept (O(TP) VALU) for bit-exact parity.
    sy = (2.0 * (sy / (H - 1) - 0.5) + 1.0) * 0.5 * (H - 1)
    sx = (2.0 * (sx / (W - 1) - 0.5) + 1.0) * 0.5 * (W - 1)

    y0f = jnp.floor(sy)
    x0f = jnp.floor(sx)
    wy = sy - y0f
    wx = sx - x0f
    y0 = y0f.astype(jnp.int32)
    x0 = x0f.astype(jnp.int32)
    y1 = y0 + 1
    x1 = x0 + 1

    # Bilinear weight * in-bounds mask (padding_mode='zeros'), all (1, TP).
    def wmask(yc, xc, w):
        valid = ((yc >= 0) & (yc < H) & (xc >= 0) & (xc < W)).astype(f32)
        return w * valid

    a00 = wmask(y0, x0, (1.0 - wy) * (1.0 - wx))
    a01 = wmask(y0, x1, (1.0 - wy) * wx)
    a10 = wmask(y1, x0, wy * (1.0 - wx))
    a11 = wmask(y1, x1, wy * wx)

    # Flattened corner indices.  Out-of-range (negative or >= HW) values never
    # match the iota below and carry zero weight, so no wrap/clamp is needed.
    i00 = y0 * W + x0
    i01 = i00 + 1
    i10 = i00 + W
    i11 = i00 + W + 1

    # Single weighted gather matrix: B[q, p] = sum_corner (q == idx_c) * a_c.
    q = lax.broadcasted_iota(jnp.int32, (HWp, TP), 0)
    b = jnp.where(q == i00, a00, 0.0)
    b = b + jnp.where(q == i01, a01, 0.0)
    b = b + jnp.where(q == i10, a10, 0.0)
    b = b + jnp.where(q == i11, a11, 0.0)

    src = src_ref[...]
    if src.dtype != f32:
        src = src.astype(f32)
    out = jnp.dot(src, b, preferred_element_type=f32)      # one MXU push per tile
    out_ref[...] = out.astype(out_ref.dtype)


def _round_up(x, m):
    return ((x + m - 1) // m) * m


def _tpu_vmem_capacity_bytes():
    try:
        info = pltpu.get_tpu_info()
        cap = getattr(info, "vmem_capacity_bytes", None)
        if cap:
            return int(cap)
    except Exception:
        pass
    return 64 * 2**20        # conservative (v7x-sized) fallback


def _vmem_need_bytes(C, HWp, TP):
    io = 2 * C * HWp * 4          # src block (double-buffered by the pipeline)
    io += 2 * 2 * TP * 4          # flow block
    io += 2 * C * TP * 4          # out block
    temps = 3 * HWp * TP * 4      # iota / compare / gather matrix live at once
    temps += 16 * C * TP * 4 + 64 * TP * 4
    return io + temps


def _pick_tile(N, C, HW, vmem_usable):
    """Largest lane-dense pixel tile that fits the per-generation VMEM budget."""
    hwp128 = _round_up(HW, 128)
    for tp in (8192, 4096, 2048, 1024, 512, 256, 128):
        if tp > hwp128:
            continue                          # don't pad HW absurdly
        hwp = _round_up(HW, tp)
        if N * (hwp // tp) < 2 and tp > 128:
            continue                          # keep >= 2 programs for megacore
        if _vmem_need_bytes(C, hwp, tp) <= vmem_usable:
            return tp
    return 128


def spatial_transformer(src, flow):
    """src: (N, C, H, W), flow: (N, 2, H, W) -> warped (N, C, H, W)."""
    N, C, H, W = src.shape
    assert flow.shape == (N, 2, H, W)
    HW = H * W

    vmem_cap = _tpu_vmem_capacity_bytes()
    vmem_usable = max(int(vmem_cap * 0.85) - 8 * 2**20, 16 * 2**20)
    TP = _pick_tile(N, C, HW, vmem_usable)
    HWp = _round_up(HW, TP)
    P = HWp // TP

    # Lane-dense flattening (free: HBM layout is already row-major) + zero-pad
    # the pixel axis to a multiple of the tile so every store is unmasked.
    src_flat = src.reshape(N, C, HW)
    flow_flat = flow.reshape(N, 2, HW)
    if HWp != HW:
        pad = ((0, 0), (0, 0), (0, HWp - HW))
        src_flat = jnp.pad(src_flat, pad)
        flow_flat = jnp.pad(flow_flat, pad)

    need = _vmem_need_bytes(C, HWp, TP)
    vmem_limit = max(32 * 2**20, min(int(vmem_cap * 0.85), need + 16 * 2**20))

    kernel = functools.partial(_warp_kernel, H=H, W=W)
    flops = 2 * C * HWp * HWp * N                      # one gather matmul per tile
    bytes_accessed = (2 * N * C * HWp * src.dtype.itemsize
                      + N * 2 * HWp * flow.dtype.itemsize)

    out_flat = pl.pallas_call(
        kernel,
        out_shape=jax.ShapeDtypeStruct((N, C, HWp), src.dtype),
        grid=(N, P),
        in_specs=[
            pl.BlockSpec((pl.Squeezed(), 2, TP), lambda n, j: (n, 0, j)),   # flow
            pl.BlockSpec((pl.Squeezed(), C, HWp), lambda n, j: (n, 0, 0)),  # src (resident over j)
        ],
        out_specs=pl.BlockSpec((pl.Squeezed(), C, TP), lambda n, j: (n, 0, j)),
        compiler_params=pltpu.CompilerParams(
            dimension_semantics=("parallel", "parallel"),
            vmem_limit_bytes=vmem_limit,
        ),
        cost_estimate=pl.CostEstimate(flops=flops, transcendentals=0,
                                      bytes_accessed=bytes_accessed),
    )(flow_flat, src_flat)

    return out_flat[:, :, :HW].reshape(N, C, H, W)


def _reference_warp(src, flow):
    """Plain-JAX reference of grid_sample(bilinear, align_corners=True, zeros pad)."""
    N, C, H, W = src.shape
    yy, xx = jnp.meshgrid(jnp.arange(H, dtype=jnp.float32),
                          jnp.arange(W, dtype=jnp.float32), indexing="ij")
    sy = yy[None] + flow[:, 0]
    sx = xx[None] + flow[:, 1]
    sy = (2.0 * (sy / (H - 1) - 0.5) + 1.0) * 0.5 * (H - 1)
    sx = (2.0 * (sx / (W - 1) - 0.5) + 1.0) * 0.5 * (W - 1)
    y0 = jnp.floor(sy).astype(jnp.int32)
    x0 = jnp.floor(sx).astype(jnp.int32)
    wy = (sy - y0)[:, None]
    wx = (sx - x0)[:, None]

    n_idx = jnp.arange(N)[:, None, None, None]
    c_idx = jnp.arange(C)[None, :, None, None]

    def gather(yi, xi):
        valid = ((yi >= 0) & (yi < H) & (xi >= 0) & (xi < W)).astype(src.dtype)
        yc = jnp.clip(yi, 0, H - 1)[:, None]
        xc = jnp.clip(xi, 0, W - 1)[:, None]
        return src[n_idx, c_idx, yc, xc] * valid[:, None]

    v00 = gather(y0, x0)
    v01 = gather(y0, x0 + 1)
    v10 = gather(y0 + 1, x0)
    v11 = gather(y0 + 1, x0 + 1)
    return ((1 - wy) * (1 - wx) * v00 + (1 - wy) * wx * v01
            + wy * (1 - wx) * v10 + wy * wx * v11)


if __name__ == "__main__":
    key = jax.random.PRNGKey(0)
    k_src, k_flow = jax.random.split(key)
    N, C, H, W = 2, 4, 16, 16
    src = jax.random.normal(k_src, (N, C, H, W), dtype=jnp.float32)
    # Displacements up to a few pixels; some go out of bounds to exercise zero padding.
    flow = 3.0 * jax.random.normal(k_flow, (N, 2, H, W), dtype=jnp.float32)

    out = jax.block_until_ready(spatial_transformer(src, flow))
    ref = jax.block_until_ready(_reference_warp(src, flow))

    assert out.shape == (N, C, H, W)
    err = float(jnp.max(jnp.abs(out - ref)))
    assert jnp.allclose(out, ref, rtol=1e-5, atol=1e-5), f"max abs err {err}"
    print("KERNEL_OK")
</pallas_src>

<mosaic_0001>
module attributes {stable_mosaic.version = 11 : i64} {
  func.func @_warp_kernel(%arg0: i32, %arg1: i32, %arg2: memref<1x2x256xf32, #tpu.memory_space<vmem>>, %arg3: memref<1x4x256xf32, #tpu.memory_space<vmem>>, %arg4: memref<1x4x256xf32, #tpu.memory_space<vmem>>) attributes {dimension_semantics = [#tpu.dimension_semantics<parallel>, #tpu.dimension_semantics<parallel>], iteration_bounds = array<i64: 2, 1>, scalar_prefetch = 0 : i64, scratch_operands = 0 : i64, tpu.core_type = #tpu.core_type<tc>, window_params = [{transform_indices = @transform_0, window_bounds = array<i64: 1, 2, 256>}, {transform_indices = @transform_1, window_bounds = array<i64: 1, 4, 256>}, {transform_indices = @transform_2, window_bounds = array<i64: 1, 4, 256>}]} {
    %c256_i32 = arith.constant 256 : i32
    %0 = arith.muli %arg1, %c256_i32 : i32
    %1 = tpu.iota {dimensions = array<i32: 1>} : vector<1x256xi32>
    %2 = vector.broadcast %0 : i32 to vector<1x256xi32>
    %3 = arith.addi %2, %1 : vector<1x256xi32>
    %4 = arith.sitofp %3 : vector<1x256xi32> to vector<1x256xf32>
    %cst = arith.constant 1.600000e+01 : f32
    %5 = vector.broadcast %cst : f32 to vector<1x256xf32>
    %6 = arith.divf %4, %5 : vector<1x256xf32>
    %7 = math.floor %6 : vector<1x256xf32>
    %cst_0 = arith.constant 1.600000e+01 : f32
    %8 = vector.broadcast %cst_0 : f32 to vector<1x256xf32>
    %9 = arith.mulf %7, %8 : vector<1x256xf32>
    %10 = arith.subf %4, %9 : vector<1x256xf32>
    %cst_1 = arith.constant 0.000000e+00 : f32
    %11 = vector.broadcast %cst_1 : f32 to vector<1x256xf32>
    %12 = arith.cmpf olt, %10, %11 : vector<1x256xf32>
    %cst_2 = arith.constant 1.000000e+00 : f32
    %13 = vector.broadcast %cst_2 : f32 to vector<1x256xf32>
    %14 = arith.subf %7, %13 : vector<1x256xf32>
    %cst_3 = arith.constant 1.600000e+01 : f32
    %15 = vector.broadcast %cst_3 : f32 to vector<1x256xf32>
    %16 = arith.cmpf oge, %10, %15 : vector<1x256xf32>
    %cst_4 = arith.constant 1.000000e+00 : f32
    %17 = vector.broadcast %cst_4 : f32 to vector<1x256xf32>
    %18 = arith.addf %7, %17 : vector<1x256xf32>
    %19 = arith.select %16, %18, %7 : vector<1x256xi1>, vector<1x256xf32>
    %20 = arith.select %12, %14, %19 : vector<1x256xi1>, vector<1x256xf32>
    %cst_5 = arith.constant 0.000000e+00 : f32
    %21 = vector.broadcast %cst_5 : f32 to vector<1x256xf32>
    %22 = arith.cmpf olt, %10, %21 : vector<1x256xf32>
    %cst_6 = arith.constant 1.600000e+01 : f32
    %23 = vector.broadcast %cst_6 : f32 to vector<1x256xf32>
    %24 = arith.addf %10, %23 : vector<1x256xf32>
    %cst_7 = arith.constant 1.600000e+01 : f32
    %25 = vector.broadcast %cst_7 : f32 to vector<1x256xf32>
    %26 = arith.cmpf oge, %10, %25 : vector<1x256xf32>
    %cst_8 = arith.constant 1.600000e+01 : f32
    %27 = vector.broadcast %cst_8 : f32 to vector<1x256xf32>
    %28 = arith.subf %10, %27 : vector<1x256xf32>
    %29 = arith.select %26, %28, %10 : vector<1x256xi1>, vector<1x256xf32>
    %30 = arith.select %22, %24, %29 : vector<1x256xi1>, vector<1x256xf32>
    %c0 = arith.constant 0 : index
    %c0_9 = arith.constant 0 : index
    %c0_10 = arith.constant 0 : index
    %31 = vector.load %arg2[%c0, %c0_9, %c0_10] : memref<1x2x256xf32, #tpu.memory_space<vmem>>, vector<1x2x256xf32>
    %32 = vector.shape_cast %31 : vector<1x2x256xf32> to vector<2x256xf32>
    %33 = vector.extract_strided_slice %32 {offsets = [0, 0], sizes = [1, 256], strides = [1, 1]} : vector<2x256xf32> to vector<1x256xf32>
    %34 = arith.addf %20, %33 : vector<1x256xf32>
    %35 = vector.extract_strided_slice %32 {offsets = [1, 0], sizes = [1, 256], strides = [1, 1]} : vector<2x256xf32> to vector<1x256xf32>
    %36 = arith.addf %30, %35 : vector<1x256xf32>
    %cst_11 = arith.constant 1.500000e+01 : f32
    %37 = vector.broadcast %cst_11 : f32 to vector<1x256xf32>
    %38 = arith.divf %34, %37 : vector<1x256xf32>
    %cst_12 = arith.constant 5.000000e-01 : f32
    %39 = vector.broadcast %cst_12 : f32 to vector<1x256xf32>
    %40 = arith.subf %38, %39 : vector<1x256xf32>
    %cst_13 = arith.constant 2.000000e+00 : f32
    %41 = vector.broadcast %cst_13 : f32 to vector<1x256xf32>
    %42 = arith.mulf %41, %40 : vector<1x256xf32>
    %cst_14 = arith.constant 1.000000e+00 : f32
    %43 = vector.broadcast %cst_14 : f32 to vector<1x256xf32>
    %44 = arith.addf %42, %43 : vector<1x256xf32>
    %cst_15 = arith.constant 5.000000e-01 : f32
    %45 = vector.broadcast %cst_15 : f32 to vector<1x256xf32>
    %46 = arith.mulf %44, %45 : vector<1x256xf32>
    %cst_16 = arith.constant 1.500000e+01 : f32
    %47 = vector.broadcast %cst_16 : f32 to vector<1x256xf32>
    %48 = arith.mulf %46, %47 : vector<1x256xf32>
    %cst_17 = arith.constant 1.500000e+01 : f32
    %49 = vector.broadcast %cst_17 : f32 to vector<1x256xf32>
    %50 = arith.divf %36, %49 : vector<1x256xf32>
    %cst_18 = arith.constant 5.000000e-01 : f32
    %51 = vector.broadcast %cst_18 : f32 to vector<1x256xf32>
    %52 = arith.subf %50, %51 : vector<1x256xf32>
    %cst_19 = arith.constant 2.000000e+00 : f32
    %53 = vector.broadcast %cst_19 : f32 to vector<1x256xf32>
    %54 = arith.mulf %53, %52 : vector<1x256xf32>
    %cst_20 = arith.constant 1.000000e+00 : f32
    %55 = vector.broadcast %cst_20 : f32 to vector<1x256xf32>
    %56 = arith.addf %54, %55 : vector<1x256xf32>
    %cst_21 = arith.constant 5.000000e-01 : f32
    %57 = vector.broadcast %cst_21 : f32 to vector<1x256xf32>
    %58 = arith.mulf %56, %57 : vector<1x256xf32>
    %cst_22 = arith.constant 1.500000e+01 : f32
    %59 = vector.broadcast %cst_22 : f32 to vector<1x256xf32>
    %60 = arith.mulf %58, %59 : vector<1x256xf32>
    %61 = math.floor %48 : vector<1x256xf32>
    %62 = math.floor %60 : vector<1x256xf32>
    %63 = arith.subf %48, %61 : vector<1x256xf32>
    %64 = arith.subf %60, %62 : vector<1x256xf32>
    %65 = arith.fptosi %61 : vector<1x256xf32> to vector<1x256xi32>
    %66 = arith.fptosi %62 : vector<1x256xf32> to vector<1x256xi32>
    %c1_i32 = arith.constant 1 : i32
    %67 = vector.broadcast %c1_i32 : i32 to vector<1x256xi32>
    %68 = arith.addi %65, %67 : vector<1x256xi32>
    %c1_i32_23 = arith.constant 1 : i32
    %69 = vector.broadcast %c1_i32_23 : i32 to vector<1x256xi32>
    %70 = arith.addi %66, %69 : vector<1x256xi32>
    %cst_24 = arith.constant 1.000000e+00 : f32
    %71 = vector.broadcast %cst_24 : f32 to vector<1x256xf32>
    %72 = arith.subf %71, %63 : vector<1x256xf32>
    %cst_25 = arith.constant 1.000000e+00 : f32
    %73 = vector.broadcast %cst_25 : f32 to vector<1x256xf32>
    %74 = arith.subf %73, %64 : vector<1x256xf32>
    %75 = arith.mulf %72, %74 : vector<1x256xf32>
    %c0_i32 = arith.constant 0 : i32
    %76 = vector.broadcast %c0_i32 : i32 to vector<1x256xi32>
    %77 = arith.cmpi sge, %65, %76 : vector<1x256xi32>
    %c16_i32 = arith.constant 16 : i32
    %78 = vector.broadcast %c16_i32 : i32 to vector<1x256xi32>
    %79 = arith.cmpi slt, %65, %78 : vector<1x256xi32>
    %80 = arith.andi %77, %79 : vector<1x256xi1>
    %c0_i32_26 = arith.constant 0 : i32
    %81 = vector.broadcast %c0_i32_26 : i32 to vector<1x256xi32>
    %82 = arith.cmpi sge, %66, %81 : vector<1x256xi32>
    %83 = arith.andi %80, %82 : vector<1x256xi1>
    %c16_i32_27 = arith.constant 16 : i32
    %84 = vector.broadcast %c16_i32_27 : i32 to vector<1x256xi32>
    %85 = arith.cmpi slt, %66, %84 : vector<1x256xi32>
    %86 = arith.andi %83, %85 : vector<1x256xi1>
    %87 = arith.extui %86 : vector<1x256xi1> to vector<1x256xi32>
    %88 = arith.sitofp %87 : vector<1x256xi32> to vector<1x256xf32>
    %89 = arith.mulf %75, %88 : vector<1x256xf32>
    %cst_28 = arith.constant 1.000000e+00 : f32
    %90 = vector.broadcast %cst_28 : f32 to vector<1x256xf32>
    %91 = arith.subf %90, %63 : vector<1x256xf32>
    %92 = arith.mulf %91, %64 : vector<1x256xf32>
    %c0_i32_29 = arith.constant 0 : i32
    %93 = vector.broadcast %c0_i32_29 : i32 to vector<1x256xi32>
    %94 = arith.cmpi sge, %65, %93 : vector<1x256xi32>
    %c16_i32_30 = arith.constant 16 : i32
    %95 = vector.broadcast %c16_i32_30 : i32 to vector<1x256xi32>
    %96 = arith.cmpi slt, %65, %95 : vector<1x256xi32>
    %97 = arith.andi %94, %96 : vector<1x256xi1>
    %c0_i32_31 = arith.constant 0 : i32
    %98 = vector.broadcast %c0_i32_31 : i32 to vector<1x256xi32>
    %99 = arith.cmpi sge, %70, %98 : vector<1x256xi32>
    %100 = arith.andi %97, %99 : vector<1x256xi1>
    %c16_i32_32 = arith.constant 16 : i32
    %101 = vector.broadcast %c16_i32_32 : i32 to vector<1x256xi32>
    %102 = arith.cmpi slt, %70, %101 : vector<1x256xi32>
    %103 = arith.andi %100, %102 : vector<1x256xi1>
    %104 = arith.extui %103 : vector<1x256xi1> to vector<1x256xi32>
    %105 = arith.sitofp %104 : vector<1x256xi32> to vector<1x256xf32>
    %106 = arith.mulf %92, %105 : vector<1x256xf32>
    %cst_33 = arith.constant 1.000000e+00 : f32
    %107 = vector.broadcast %cst_33 : f32 to vector<1x256xf32>
    %108 = arith.subf %107, %64 : vector<1x256xf32>
    %109 = arith.mulf %63, %108 : vector<1x256xf32>
    %c0_i32_34 = arith.constant 0 : i32
    %110 = vector.broadcast %c0_i32_34 : i32 to vector<1x256xi32>
    %111 = arith.cmpi sge, %68, %110 : vector<1x256xi32>
    %c16_i32_35 = arith.constant 16 : i32
    %112 = vector.broadcast %c16_i32_35 : i32 to vector<1x256xi32>
    %113 = arith.cmpi slt, %68, %112 : vector<1x256xi32>
    %114 = arith.andi %111, %113 : vector<1x256xi1>
    %c0_i32_36 = arith.constant 0 : i32
    %115 = vector.broadcast %c0_i32_36 : i32 to vector<1x256xi32>
    %116 = arith.cmpi sge, %66, %115 : vector<1x256xi32>
    %117 = arith.andi %114, %116 : vector<1x256xi1>
    %c16_i32_37 = arith.constant 16 : i32
    %118 = vector.broadcast %c16_i32_37 : i32 to vector<1x256xi32>
    %119 = arith.cmpi slt, %66, %118 : vector<1x256xi32>
    %120 = arith.andi %117, %119 : vector<1x256xi1>
    %121 = arith.extui %120 : vector<1x256xi1> to vector<1x256xi32>
    %122 = arith.sitofp %121 : vector<1x256xi32> to vector<1x256xf32>
    %123 = arith.mulf %109, %122 : vector<1x256xf32>
    %124 = arith.mulf %63, %64 : vector<1x256xf32>
    %c0_i32_38 = arith.constant 0 : i32
    %125 = vector.broadcast %c0_i32_38 : i32 to vector<1x256xi32>
    %126 = arith.cmpi sge, %68, %125 : vector<1x256xi32>
    %c16_i32_39 = arith.constant 16 : i32
    %127 = vector.broadcast %c16_i32_39 : i32 to vector<1x256xi32>
    %128 = arith.cmpi slt, %68, %127 : vector<1x256xi32>
    %129 = arith.andi %126, %128 : vector<1x256xi1>
    %c0_i32_40 = arith.constant 0 : i32
    %130 = vector.broadcast %c0_i32_40 : i32 to vector<1x256xi32>
    %131 = arith.cmpi sge, %70, %130 : vector<1x256xi32>
    %132 = arith.andi %129, %131 : vector<1x256xi1>
    %c16_i32_41 = arith.constant 16 : i32
    %133 = vector.broadcast %c16_i32_41 : i32 to vector<1x256xi32>
    %134 = arith.cmpi slt, %70, %133 : vector<1x256xi32>
    %135 = arith.andi %132, %134 : vector<1x256xi1>
    %136 = arith.extui %135 : vector<1x256xi1> to vector<1x256xi32>
    %137 = arith.sitofp %136 : vector<1x256xi32> to vector<1x256xf32>
    %138 = arith.mulf %124, %137 : vector<1x256xf32>
    %c16_i32_42 = arith.constant 16 : i32
    %139 = vector.broadcast %c16_i32_42 : i32 to vector<1x256xi32>
    %140 = arith.muli %65, %139 : vector<1x256xi32>
    %141 = arith.addi %140, %66 : vector<1x256xi32>
    %c1_i32_43 = arith.constant 1 : i32
    %142 = vector.broadcast %c1_i32_43 : i32 to vector<1x256xi32>
    %143 = arith.addi %141, %142 : vector<1x256xi32>
    %c16_i32_44 = arith.constant 16 : i32
    %144 = vector.broadcast %c16_i32_44 : i32 to vector<1x256xi32>
    %145 = arith.addi %141, %144 : vector<1x256xi32>
    %c16_i32_45 = arith.constant 16 : i32
    %146 = vector.broadcast %c16_i32_45 : i32 to vector<1x256xi32>
    %147 = arith.addi %141, %146 : vector<1x256xi32>
    %c1_i32_46 = arith.constant 1 : i32
    %148 = vector.broadcast %c1_i32_46 : i32 to vector<1x256xi32>
    %149 = arith.addi %147, %148 : vector<1x256xi32>
    %150 = tpu.iota {dimensions = array<i32: 0>} : vector<256x256xi32>
    %151 = vector.broadcast %141 : vector<1x256xi32> to vector<256x256xi32>
    %152 = arith.cmpi eq, %150, %151 : vector<256x256xi32>
    %cst_47 = arith.constant 0.000000e+00 : f32
    %153 = vector.shape_cast %89 : vector<1x256xf32> to vector<1x256xf32>
    %154 = vector.broadcast %153 : vector<1x256xf32> to vector<256x256xf32>
    %155 = vector.broadcast %cst_47 : f32 to vector<256x256xf32>
    %156 = arith.select %152, %154, %155 : vector<256x256xi1>, vector<256x256xf32>
    %157 = vector.broadcast %143 : vector<1x256xi32> to vector<256x256xi32>
    %158 = arith.cmpi eq, %150, %157 : vector<256x256xi32>
    %cst_48 = arith.constant 0.000000e+00 : f32
    %159 = vector.shape_cast %106 : vector<1x256xf32> to vector<1x256xf32>
    %160 = vector.broadcast %159 : vector<1x256xf32> to vector<256x256xf32>
    %161 = vector.broadcast %cst_48 : f32 to vector<256x256xf32>
    %162 = arith.select %158, %160, %161 : vector<256x256xi1>, vector<256x256xf32>
    %163 = arith.addf %156, %162 : vector<256x256xf32>
    %164 = vector.broadcast %145 : vector<1x256xi32> to vector<256x256xi32>
    %165 = arith.cmpi eq, %150, %164 : vector<256x256xi32>
    %cst_49 = arith.constant 0.000000e+00 : f32
    %166 = vector.shape_cast %123 : vector<1x256xf32> to vector<1x256xf32>
    %167 = vector.broadcast %166 : vector<1x256xf32> to vector<256x256xf32>
    %168 = vector.broadcast %cst_49 : f32 to vector<256x256xf32>
    %169 = arith.select %165, %167, %168 : vector<256x256xi1>, vector<256x256xf32>
    %170 = arith.addf %163, %169 : vector<256x256xf32>
    %171 = vector.broadcast %149 : vector<1x256xi32> to vector<256x256xi32>
    %172 = arith.cmpi eq, %150, %171 : vector<256x256xi32>
    %cst_50 = arith.constant 0.000000e+00 : f32
    %173 = vector.shape_cast %138 : vector<1x256xf32> to vector<1x256xf32>
    %174 = vector.broadcast %173 : vector<1x256xf32> to vector<256x256xf32>
    %175 = vector.broadcast %cst_50 : f32 to vector<256x256xf32>
    %176 = arith.select %172, %174, %175 : vector<256x256xi1>, vector<256x256xf32>
    %177 = arith.addf %170, %176 : vector<256x256xf32>
    %c0_51 = arith.constant 0 : index
    %c0_52 = arith.constant 0 : index
    %c0_53 = arith.constant 0 : index
    %178 = vector.load %arg3[%c0_51, %c0_52, %c0_53] : memref<1x4x256xf32, #tpu.memory_space<vmem>>, vector<1x4x256xf32>
    %179 = vector.shape_cast %178 : vector<1x4x256xf32> to vector<4x256xf32>
    %cst_54 = arith.constant dense<0.000000e+00> : vector<4x256xf32>
    %180 = tpu.matmul %179, %177, %cst_54 {dimension_numbers = #tpu.dot_dimension_numbers<[1], [0], [0], [1], [0, 0, 1, 1], [], []>} : vector<4x256xf32>, vector<256x256xf32>, vector<4x256xf32> -> vector<4x256xf32>
    %c0_55 = arith.constant 0 : index
    %c0_56 = arith.constant 0 : index
    %c0_57 = arith.constant 0 : index
    %181 = vector.load %arg4[%c0_55, %c0_56, %c0_57] : memref<1x4x256xf32, #tpu.memory_space<vmem>>, vector<1x4x256xf32>
    %182 = vector.shape_cast %181 : vector<1x4x256xf32> to vector<4x256xf32>
    %183 = vector.shape_cast %180 : vector<4x256xf32> to vector<1x4x256xf32>
    tpu.vector_store %arg4[%c0_55, %c0_56, %c0_57], %183 {strides = array<i32>} : memref<1x4x256xf32, #tpu.memory_space<vmem>>, vector<1x4x256xf32>,
    return
  }
  func.func @transform_0(%arg0: i32, %arg1: i32) -> (i32, i32, i32) {
    %c0_i32 = arith.constant 0 : i32
    %c0_i32_0 = arith.constant 0 : i32
    return %arg0, %c0_i32, %arg1 : i32, i32, i32
  }
  func.func @transform_1(%arg0: i32, %arg1: i32) -> (i32, i32, i32) {
    %c0_i32 = arith.constant 0 : i32
    %c0_i32_0 = arith.constant 0 : i32
    %c0_i32_1 = arith.constant 0 : i32
    return %arg0, %c0_i32, %c0_i32_0 : i32, i32, i32
  }
  func.func @transform_2(%arg0: i32, %arg1: i32) -> (i32, i32, i32) {
    %c0_i32 = arith.constant 0 : i32
    %c0_i32_0 = arith.constant 0 : i32
    return %arg0, %c0_i32, %arg1 : i32, i32, i32
  }
}

</mosaic_0001>

<bundles_post_ra>
// kernel: tpu_custom_call.1
= control target key start
LH: loop header
LB: loop body
LE: loop exit
PB: predicated region body
PF: predicated region fallthrough
CT: control target
= control target key end

     0   :  { %7 = vsyncpa [#allocation3], 0  ;;  %s2841_s0 = inlined_call_operand.hbm [shape: f32[2,2,256], index: 0, kind: input, shape index: {}]   ;;  %s2842_s1 = inlined_call_operand.hbm [shape: f32[2,4,256], index: 1, kind: input, shape index: {}]   ;;  %s2843_s2 = inlined_call_operand.hbm [shape: f32[2,4,256], index: 2, kind: output, shape index: {}]  }
   0x1   :  { %9 = vsyncpa [#allocation3 + $0x1], 0 }
   0x2   :  { %10 = vsyncpa [#allocation6], 0 }
   0x3   :  { %12 = vsyncpa [#allocation6 + $0x1], 0 }
   0x4   :  { %13 = vsyncpa [#allocation4], 0 }
   0x5   :  { %15 = vsyncpa [#allocation4 + $0x1], 0  ;;  %s1686_s9 = smov 0   ;;  %s1688_s10 = smov 0  }
   0x6   :  { %s1690_s11 = smov 0   ;;  %s1692_s12 = smov 0  }
   0x7   :  { %s1694_s13 = smov 0   ;;  %s1696_s14 = smov 0  }
   0x8 LB: > { %s1410_s15 = sadd.s32 4294967295, %s1665_s14   ;;  %s1411_s16 = sadd.s32 4294967294, %s1665_s14   ;;  %s1665_s14 = sphi %s1696_s14, %s21_s14   ;;  %s1661_s13 = sphi %s1694_s13, %s2867_s13   ;;  %s1657_s12 = sphi %s1692_s12, %s2866_s12   ;;  %s1653_s11 = sphi %s1690_s11, %s2865_s11   ;;  %s1649_s10 = sphi %s1688_s10, %s2864_s10   ;;  %s1645_s9 = sphi %s1686_s9, %s2863_s9  }
   0x9   : > { %s33_s17 = sadd.s32 1, %s1661_s13  ;;  %s42_s18 = sadd.s32 1, %s1653_s11 }
   0xa   : > { %p35_p0 = scmp.ge.s32.totalorder %s33_s17, 2  ;;  %p49_p1 = scmp.ne.s32.totalorder %s1653_s11, %s1649_s10 }
   0xb   : > { %p50_p2 = scmp.eq.s32.totalorder %s1665_s14, 0  ;;  %p55_p3 = scmp.ne.s32.totalorder %s1649_s10, %s1645_s9 }
   0xc   : > { %s2869_s17 = smov (%p35_p0, %s33_s17), 0  ;;  %p56_p5 = scmp.eq.s32.totalorder %s1410_s15, 0 }
   0xd   : > { %p1727_p4 = por %p50_p2, %p49_p1  ;;  %s37_s20 = ssub.s32 %s1661_s13, %s2869_s17 }
   0xe   : > { %p107_p6 = scmp.eq.s32.totalorder %s1410_s15, 1  ;;  %p40_p7 = scmp.eq.s32.totalorder %s37_s20, 0 }
   0xf   : > { %p1733_p8 = por %p56_p5, %p55_p3  ;;  %p113_p10 = scmp.eq.s32.totalorder %s1411_s16, 1 }
  0x10   : > { %p1737_p9 = por %p107_p6, %p49_p1  ;;  %p1473_p13 = scmp.lt.s32.totalorder %s1665_s14, 2 }
  0x11   : > { %s1742_s23 = scalar_select %p40_p7, %s1653_s11, %s42_s18  }
  0x12   : > { %p1744_p11 = por %p113_p10, %p55_p3  ;;  %s1751_s25 = sand.u32 1, %s1653_s11  }
  0x13   : > { %s1414_s26 = sshll.u32 %s1751_s25, 2  ;;  %s1445_s27 = sshll.u32 %s1661_s13, 6 }
  0x14   : > { %s145_s30 = scalar_lea.hbm %s2841_s0, %s1445_s27  ;;  %s137_s3 = scalar_lea.vmem [#allocation2], %s1414_s26 }
  0x15   : > { %s147_s4 = sshll.u32 %s137_s3, 4  ;;  %p1760_p0 = pnand %p1473_p13, %p1727_p4  ;;  %s148_s4 = int_to_ptr.vmem [resolvable:$true] %s147_s4 }
  0x16   : > { %p1420_p1 = scmp.ge.s32.totalorder %s1665_s14, 1  ;;  %p171_p2 = scmp.lt.s32.totalorder %s1665_s14, 3 }
  0x17   : > { %s134_s6 = scalar_lea.sflag [#allocation3], %s1751_s25  ;;  %p1527_p3 = pneg %p1760_p0 }
  0x18   : > { %s1538_s7 = scalar_lea.vmem %s148_s4, 64  ;;  %s1667_s8 = smov [#allocation2]  }
  0x19   : > { %p1539_p5 = scmp.ne.s32.totalorder %s148_s4, %s1538_s7  ;;  %s1543_s15 = sshll.u32 %s1667_s8, 4  ;;  %s1544_s15 = int_to_ptr.vmem [resolvable:$false] %s1543_s15 }
  0x1a   : > { %s1545_s16 = scalar_lea.vmem %s1544_s15, 128  ;;  %p1546_p4 = scmp.lt.s32.totalorder %s148_s4, %s1544_s15 }
  0x1b   : > { %p1541_p6 = pnand %p1539_p5, %p1527_p3  ;;  %p1547_p10 = scmp.lt.s32.totalorder %s1545_s16, %s1538_s7 }
  0x1d   : > { %p1542_p7 = pneg %p1541_p6  ;;  %p1548_p13 = por %p1547_p10, %p1546_p4 }
  0x1f   : > { %p1549_p12 = pnand %p1548_p13, %p1542_p7 }
  0x21   : > { %1552 = shalt.err (!%p1549_p12)
}
  0x22   : > { %1465 = dma.hbm_to_vmem [thread:$0]  (!%p1760_p0), %s145_s30, 64, %s148_s4, %s134_s6  }
  0x23   : > { %p1778_p5 = pnand %p1420_p1, %p171_p2  ;;  %s1417_s19 = sshll.u32 %s1751_s25, 3 }
  0x24   : > { %s1446_s20 = sshll.u32 %s1661_s13, 7  ;;  %s158_s29 = scalar_lea.vmem [#allocation5], %s1417_s19 }
  0x25   : > { %s164_s28 = scalar_lea.hbm %s2842_s1, %s1446_s20  ;;  %s166_s3 = sshll.u32 %s158_s29, 4  ;;  %s167_s3 = int_to_ptr.vmem [resolvable:$true] %s166_s3 }
  0x26   : > { %s155_s7 = scalar_lea.sflag [#allocation6], %s1751_s25  ;;  %s1566_s8 = scalar_lea.vmem %s167_s3, 128 }
  0x27   : > { %p1567_p12 = scmp.ne.s32.totalorder %s167_s3, %s1566_s8  ;;  %s1668_s30 = smov [#allocation5]  }
  0x28   : > { %s1571_s4 = sshll.u32 %s1668_s30, 4  ;;  %s1572_s4 = int_to_ptr.vmem [resolvable:$false] %s1571_s4 }
  0x29   : > { %p1569_p6 = pnand %p1567_p12, %p1527_p3  ;;  %s1573_s6 = scalar_lea.vmem %s1572_s4, 256 }
  0x2a   : > { %p1574_p1 = scmp.lt.s32.totalorder %s167_s3, %s1572_s4  ;;  %p1575_p2 = scmp.lt.s32.totalorder %s1573_s6, %s1566_s8 }
  0x2b   : > { %p1570_p7 = pneg %p1569_p6 }
  0x2c   : > { %p1576_p4 = por %p1575_p2, %p1574_p1 }
  0x2e   : > { %p1577_p10 = pnand %p1576_p4, %p1570_p7 }
  0x30   : > { %1580 = shalt.err (!%p1577_p10)
}
  0x31   : > { %1468 = dma.hbm_to_vmem [thread:$0]  (!%p1760_p0), %s164_s28, 128, %s167_s3, %s155_s7  }
  0x32   : > { %175 = sbr.rel (%p1778_p5) target bundleno = 510 (0x1fe), region = 28  ;;  %s1796_s25 = sand.u32 (!%p1778_p5), 1, %s1649_s10  }
  0x33   : > { %s1421_s15 = sshll.u32 (!%p1778_p5), %s1796_s25, 2  ;;  %s178_s16 = scalar_lea.sflag (!%p1778_p5), [#allocation3], %s1796_s25 }
  0x34   : > { %s181_s19 = scalar_lea.vmem (!%p1778_p5), [#allocation2], %s1421_s15 }
  0x37   : > { %1632 = dma.done.wait (%p1733_p8), %s178_s16, 64  }
  0x38   : > { %1634 = vsyncadd (%p1733_p8), %s178_s16, 4294967232  ;;  %s1422_s5 = sshll.u32 %s1796_s25, 3  ;;  %s187_s18 = scalar_lea.sflag [#allocation6], %s1796_s25 }
  0x39   : > { %s1808_s20 = scalar_lea.vmem [#allocation5], %s1422_s5 }
  0x3a   : > { %1636 = dma.done.wait (%p1733_p8), %s187_s18, 128  }
  0x3b   : > { %1638 = vsyncadd (%p1733_p8), %s187_s18, 4294967168  ;;  %v219_v0 = vlaneseq  ;;  %v256_v13 = vld [vmem:[%s181_s19] sm:$0xf]  ;;  %s1447_s21 = sshll.u32 %s1657_s12, 7  ;;  %s215_s26 = scalar_lea.vmem [#allocation7], %s1422_s5 }
  0x3c   : > { %s1303_s27 = sshll.u32 %s215_s26, 4  ;;  %s1301_s3 = scalar_lea.hbm %s2843_s2, %s1447_s21  ;;  %s1304_s27 = int_to_ptr.vmem [resolvable:$true] %s1303_s27 }
  0x3d   : > { %v220_v1 = vand.u32 127, %v219_v0  ;;  %v1814_v4 = vshrl.u32 %v219_v0, 7  ;;  %s1287_s7 = scalar_lea.sflag [#allocation4], %s1796_s25  ;;  %s1581_s8 = scalar_lea.vmem %s1304_s27, 128 }
  0x3e   : > { %p1582_p8 = scmp.ne.s32.totalorder %s1304_s27, %s1581_s8  ;;  %s1670_s30 = smov [#allocation7]  }
  0x3f   : > { %v221_v2 = vadd.s32 128, %v220_v1  ;;  %v225_v3 = vcvt.s32.f32 %v220_v1  ;;  %v1817_v9 = vsub.s32 0, %v1814_v4  ;;  %v264_v10 = vsub.s32 2, %v1814_v4  ;;  %s1585_s4 = sshll.u32 %s1670_s30, 4  ;;  %s1586_s4 = int_to_ptr.vmem [resolvable:$false] %s1585_s4 }
  0x40   : > { %v272_v15 = vsub.s32 1, %v1814_v4  ;;  %v276_v16 = vsub.s32 3, %v1814_v4  ;;  %v1826_v59 = vadd.s32 120, %v1814_v4  ;;  %v1829_v60 = vadd.s32 112, %v1814_v4  ;;  %p1583_p0 = pnand %p1582_p8, %p1737_p9  ;;  %s1587_s12 = scalar_lea.vmem %s1586_s4, 256 }
  0x41   : > { %v226_v5 = vcvt.s32.f32 %v221_v2  ;;  %v228_v6 = vmul.f32 0.0625, %v225_v3  ;;  %v261_v22 = vrot.slane %v256_v13, %v1817_v9  ;;  %v265_v23 = vrot.slane %v256_v13, %v264_v10  ;;  %p1588_p13 = scmp.lt.s32.totalorder %s1304_s27, %s1586_s4  ;;  %p1589_p5 = scmp.lt.s32.totalorder %s1587_s12, %s1581_s8 }
  0x42   : > { %v273_v28 = vrot.slane %v256_v13, %v272_v15  ;;  %v277_v29 = vrot.slane %v256_v13, %v276_v16  ;;  %v1832_v61 = vadd.s32 104, %v1814_v4  ;;  %v1835_v2 = vadd.s32 96, %v1814_v4  ;;  %p1584_p3 = pneg %p1583_p0 }
  0x43   : > { %v229_v7 = vmul.f32 0.0625, %v226_v5  ;;  %v230_v8 = vfloor.f32 %v228_v6  ;;  %v1844_v6 = vadd.s32 72, %v1814_v4  ;;  %v1850_v13 = vadd.s32 56, %v1814_v4  ;;  %p1590_p12 = por %p1589_p5, %p1588_p13 }
  0x44   : > { %v1856_v15 = vadd.s32 40, %v1814_v4 }
  0x45   : > { %v231_v11 = vfloor.f32 %v229_v7  ;;  %v232_v12 = vmul.f32 16.0, %v230_v8  ;;  %v242_v14 = vadd.f32 1.0, %v230_v8  ;;  %v1424_v19 = vadd.f32 -1.0, %v230_v8  ;;  %p1591_p6 = pnand %p1590_p12, %p1584_p3 }
  0x47   : > { %v233_v17 = vmul.f32 16.0, %v231_v11  ;;  %v234_v18 = vsub.f32 %v225_v3, %v232_v12  ;;  %v1425_v20 = vadd.f32 -1.0, %v231_v11  ;;  %v243_v21 = vadd.f32 1.0, %v231_v11 }
  0x48   : > { %v1838_v3 = vadd.s32 88, %v1814_v4  ;;  %v1847_v12 = vadd.s32 64, %v1814_v4 }
  0x49   : > { %v235_v24 = vsub.f32 %v226_v5, %v233_v17  ;;  %vm236_vm0 = vcmp.lt.f32.partialorder %v234_v18, 0.0  ;;  %vm240_vm1 = vcmp.ge.f32.partialorder %v234_v18, 16.0  ;;  %v248_v25 = vadd.f32 16.0, %v234_v18 }
  0x4a   : > { %v244_v26 = vsel %vm240_vm1, %v242_v14, %v230_v8  ;;  %v1426_v27 = vadd.f32 -16.0, %v234_v18  ;;  %v1841_v5 = vadd.s32 80, %v1814_v4  ;;  %v1853_v14 = vadd.s32 48, %v1814_v4 }
  0x4b   : > { %vm237_vm2 = vcmp.lt.f32.partialorder %v235_v24, 0.0  ;;  %vm241_vm3 = vcmp.ge.f32.partialorder %v235_v24, 16.0  ;;  %v246_v30 = vsel %vm236_vm0, %v1424_v19, %v244_v26  ;;  %v249_v31 = vadd.f32 16.0, %v235_v24 }
  0x4c   : > { %v245_v32 = vsel %vm241_vm3, %v243_v21, %v231_v11  ;;  %v1427_v33 = vadd.f32 -16.0, %v235_v24  ;;  %v252_v34 = vsel %vm240_vm1, %v1426_v27, %v234_v18  ;;  %v268_v35 = vadd.f32 %v261_v22, %v246_v30 }
  0x4d   : > { %v247_v36 = vsel %vm237_vm2, %v1425_v20, %v245_v32  ;;  %v254_v37 = vsel %vm236_vm0, %v248_v25, %v252_v34  ;;  %v1859_v19 = vadd.s32 32, %v1814_v4  ;;  %v1864_v22 = vadd.s32 24, %v1814_v4 }
  0x4e   : > { %v253_v38 = vsel %vm241_vm3, %v1427_v33, %v235_v24  ;;  %v269_v39 = vadd.f32 %v265_v23, %v247_v36  ;;  %v280_v40 = vadd.f32 %v273_v28, %v254_v37  ;;  %v283_v41 = vmul.f32 0.06666667, %v268_v35 }
  0x4f   : > { %v255_v42 = vsel %vm237_vm2, %v249_v31, %v253_v38  ;;  %v1867_v23 = vadd.s32 16, %v1814_v4  ;;  %v1872_v30 = vadd.s32 8, %v1814_v4  ;;  %v1875_v31 = vadd.s32 248, %v1814_v4 }
  0x50   : > { %v281_v43 = vadd.f32 %v277_v29, %v255_v42  ;;  %v284_v44 = vmul.f32 0.06666667, %v269_v39  ;;  %v1428_v45 = vadd.f32 -0.5, %v283_v41  ;;  %v295_v46 = vmul.f32 0.06666667, %v280_v40 }
  0x51   : > { %v1878_v35 = vadd.s32 240, %v1814_v4 }
  0x52   : > { %v1429_v47 = vadd.f32 -0.5, %v284_v44  ;;  %v287_v48 = vmul.f32 2.0, %v1428_v45  ;;  %v296_v49 = vmul.f32 0.06666667, %v281_v43  ;;  %v1430_v50 = vadd.f32 -0.5, %v295_v46 }
  0x53   : > { %v1890_v43 = vadd.s32 232, %v1814_v4 }
  0x54   : > { %v288_v51 = vmul.f32 2.0, %v1429_v47  ;;  %v289_v52 = vadd.f32 1.0, %v287_v48  ;;  %v1431_v53 = vadd.f32 -0.5, %v296_v49  ;;  %v299_v54 = vmul.f32 2.0, %v1430_v50 }
  0x55   : > { %v1907_v49 = vadd.s32 224, %v1814_v4  ;;  %v1910_v50 = vadd.s32 216, %v1814_v4 }
  0x56   : > { %v290_v55 = vadd.f32 1.0, %v288_v51  ;;  %v291_v56 = vmul.f32 0.5, %v289_v52  ;;  %v300_v57 = vmul.f32 2.0, %v1431_v53  ;;  %v301_v58 = vadd.f32 1.0, %v299_v54 }
  0x58   : > { %v292_v62 = vmul.f32 0.5, %v290_v55  ;;  %v293_v63 = vmul.f32 15.0, %v291_v56  ;;  %v302_v0 = vadd.f32 1.0, %v300_v57  ;;  %v303_v1 = vmul.f32 0.5, %v301_v58 }
  0x59   : > { %v1669_v57 = vmov 0.0  }
  0x5a   : > { %v294_v7 = vmul.f32 15.0, %v292_v62  ;;  %v304_v8 = vmul.f32 0.5, %v302_v0  ;;  %v305_v10 = vmul.f32 15.0, %v303_v1  ;;  %v307_v11 = vfloor.f32 %v293_v63 }
  0x5c   : > { %v306_v16 = vmul.f32 15.0, %v304_v8  ;;  %v308_v17 = vfloor.f32 %v294_v7  ;;  %v309_v18 = vfloor.f32 %v305_v10  ;;  %v1861_v20 = vsub.f32 %v293_v63, %v307_v11 }
  0x5d   : > { %v1448_v21 = vtrunc.f32 %v307_v11 }
  0x5e   : > { %v310_v24 = vfloor.f32 %v306_v16  ;;  %v1869_v25 = vsub.f32 %v294_v7, %v308_v17  ;;  %v313_v26 = vsub.f32 %v305_v10, %v309_v18  ;;  %v1450_v27 = vtrunc.f32 %v308_v17 }
  0x5f   : > { %v1449_v28 = vcvt.f32.s32 %v1448_v21  ;;  %v1452_v29 = vtrunc.f32 %v309_v18  ;;  %v323_v37 = vsub.f32 1.0, %v1861_v20  ;;  %v1957_v18 = vadd.s32 208, %v1814_v4 }
  0x60   : > { %v314_v32 = vsub.f32 %v306_v16, %v310_v24  ;;  %v1451_v33 = vcvt.f32.s32 %v1450_v27  ;;  %v1454_v34 = vtrunc.f32 %v310_v24  ;;  %v324_v38 = vsub.f32 1.0, %v1869_v25 }
  0x61   : > { %v1880_v36 = vcvt.f32.s32 %v1452_v29  ;;  %vm329_vm4 = vcmp.ge.s32.totalorder %v1449_v28, 0  ;;  %v325_v40 = vsub.f32 1.0, %v313_v26  ;;  %vm331_vm6 = vcmp.lt.s32.totalorder %v1449_v28, 16 }
  0x62   : > { %v1884_v39 = vcvt.f32.s32 %v1454_v34  ;;  %v326_v41 = vsub.f32 1.0, %v314_v32  ;;  %vm330_vm5 = vcmp.ge.s32.totalorder %v1451_v33, 0  ;;  %vm332_vm7 = vcmp.lt.s32.totalorder %v1451_v33, 16  ;;  %vm1895_vm8 = vmand %vm329_vm4, %vm331_vm6 }
  0x63   : > { %v1887_v42 = vadd.s32 1, %v1880_v36  ;;  %v319_v44 = vadd.s32 1, %v1449_v28  ;;  %vm335_vm9 = vcmp.ge.s32.totalorder %v1880_v36, 0  ;;  %v320_v47 = vadd.s32 1, %v1451_v33  ;;  %vm1901_vm11 = vmand %vm330_vm5, %vm332_vm7 }
  0x64   : > { %v1893_v45 = vadd.s32 1, %v1884_v39  ;;  %vm2845_vm10 = vcmp.ge.s32.totalorder %v1884_v39, 0  ;;  %vm2844_vm12 = vcmp.lt.s32.totalorder %v1880_v36, 16  ;;  %v327_v51 = vmul.f32 %v325_v40, %v323_v37  ;;  %vm337_vm13 = vmand %vm1895_vm8, %vm335_vm9 }
  0x65   : > { %v328_v52 = vmul.f32 %v326_v41, %v324_v38  ;;  %vm340_vm14 = vcmp.lt.s32.totalorder %v1884_v39, 16  ;;  %v349_v53 = vmul.f32 %v323_v37, %v313_v26  ;;  %vm338_vm15 = vmand %vm1901_vm11, %vm2845_vm10  ;;  %v350_v54 = vmul.f32 %v324_v38, %v314_v32 }
  0x66   : > { %vm351_vm0 = vcmp.ge.s32.totalorder %v1887_v42, 0  ;;  %vm352_vm1 = vcmp.ge.s32.totalorder %v1893_v45, 0  ;;  %vm355_vm2 = vcmp.lt.s32.totalorder %v1887_v42, 16  ;;  %vm341_vm3 = vmand %vm337_vm13, %vm2844_vm12  ;;  %vm356_vm4 = vcmp.lt.s32.totalorder %v1893_v45, 16 }
  0x67   : > { %v365_v55 = vmul.f32 %v325_v40, %v1861_v20  ;;  %v1929_v56 = vmul.f32 %v326_v41, %v1869_v25  ;;  %vm367_vm5 = vcmp.ge.s32.totalorder %v319_v44, 0  ;;  %vm342_vm6 = vmand %vm338_vm15, %vm340_vm14  ;;  %v1432_v58 = vsel %vm341_vm3, 1.0, %v1669_v57 }
  0x68   : > { %vm368_vm7 = vcmp.ge.s32.totalorder %v320_v47, 0  ;;  %v395_v62 = vmul.u32 16, %v1449_v28  ;;  %v396_v63 = vmul.u32 16, %v1451_v33  ;;  %v1433_v0 = vsel %vm342_vm6, 1.0, %v1669_v57  ;;  %vm353_vm13 = vmand %vm1895_vm8, %vm351_vm0 }
  0x69   : > { %v347_v1 = vmul.f32 %v1432_v58, %v327_v51  ;;  %vm369_vm12 = vcmp.lt.s32.totalorder %v319_v44, 16  ;;  %vm370_vm10 = vcmp.lt.s32.totalorder %v320_v47, 16  ;;  %v348_v7 = vmul.f32 %v1433_v0, %v328_v52  ;;  %vm354_vm15 = vmand %vm1901_vm11, %vm352_vm1 }
  0x6a   : > { %v1944_v8 = vmul.f32 %v313_v26, %v1861_v20  ;;  %v397_v10 = vadd.s32 %v1880_v36, %v395_v62  ;;  %v398_v11 = vadd.s32 %v1884_v39, %v396_v63  ;;  %vm357_vm3 = vmand %vm353_vm13, %vm355_vm2  ;;  %v1951_v16 = vmul.f32 %v314_v32, %v1869_v25 }
  0x6b   : > { %v1954_v17 = vrot.slane %v347_v1, %v1817_v9  ;;  %v1960_v21 = vadd.s32 200, %v1814_v4  ;;  %vm358_vm8 = vmand %vm354_vm15, %vm356_vm4  ;;  %v1434_v20 = vsel %vm357_vm3, 1.0, %v1669_v57  ;;  %v1985_v41 = vrot.slane %v348_v7, %v1817_v9 }
  0x6c   : > { %v399_v24 = vadd.s32 1, %v397_v10  ;;  %v400_v26 = vadd.s32 1, %v398_v11  ;;  %v401_v27 = vadd.s32 16, %v397_v10  ;;  %v1435_v25 = vsel %vm358_vm8, 1.0, %v1669_v57  ;;  %vm1968_vm11 = vmand %vm367_vm5, %vm369_vm12 }
  0x6d   : > { %v363_v28 = vmul.f32 %v1434_v20, %v349_v53  ;;  %v402_v32 = vadd.s32 16, %v398_v11  ;;  %v1973_v33 = vrot.slane %v397_v10, %v1817_v9  ;;  %v364_v34 = vmul.f32 %v1435_v25, %v350_v54  ;;  %vm1977_vm6 = vmand %vm368_vm7, %vm370_vm10 }
  0x6e   : > { %v403_v38 = vadd.s32 1, %v401_v27  ;;  %v1982_v40 = vrot.slane %v398_v11, %v1817_v9  ;;  %vm373_vm12 = vmand %vm1968_vm11, %vm335_vm9  ;;  %v1992_v46 = vrot.slane %v399_v24, %v1817_v9  ;;  %v1995_v47 = vrot.slane %v400_v26, %v1817_v9 }
  0x6f   : > { %v404_v44 = vadd.s32 1, %v402_v32  ;;  %v1998_v48 = vrot.slane %v363_v28, %v1817_v9  ;;  %vm2860_vm10 = vcmp.ge.s32.totalorder %v1884_v39, 0  ;;  %v2005_v51 = vrot.slane %v364_v34, %v1817_v9 }
  0x70   : > { %vm374_vm5 = vmand %vm1977_vm6, %vm2860_vm10  ;;  %v2008_v52 = vrot.slane %v401_v27, %v1817_v9  ;;  %v2011_v53 = vrot.slane %v402_v32, %v1817_v9  ;;  %v2014_v54 = vrot.slane %v403_v38, %v1817_v9  ;;  %vm2861_vm9 = vcmp.lt.s32.totalorder %v1880_v36, 16 }
  0x71   : > { %vm375_vm7 = vmand %vm373_vm12, %vm2861_vm9  ;;  %v2019_v58 = vrot.slane %v404_v44, %v1817_v9  ;;  %vm477_vm13 = vcmp.eq.s32.totalorder %v1826_v59, %v1982_v40  ;;  %vm621_vm15 = vcmp.eq.s32.totalorder %v1826_v59, %v1995_v47  ;;  %vm476_vm3 = vcmp.eq.s32.totalorder %v1826_v59, %v1973_v33 }
  0x72   : > { %vm376_vm8 = vmand %vm374_vm5, %vm340_vm14  ;;  %v1436_v62 = vsel %vm375_vm7, 1.0, %v1669_v57  ;;  %v549_v36 = vsel %vm477_vm13, %v1985_v41, 0.0  ;;  %v693_v63 = vsel %vm621_vm15, %v2005_v51, 0.0  ;;  %vm829_vm12 = vcmp.eq.s32.totalorder %v1826_v59, %v2011_v53 }
  0x73   : > { %v1437_v0 = vsel %vm376_vm8, 1.0, %v1669_v57  ;;  %v381_v1 = vmul.f32 %v1436_v62, %v365_v55  ;;  %vm385_vm10 = vmand %vm1968_vm11, %vm351_vm0  ;;  %v757_v7 = vadd.f32 %v693_v63, %v549_v36  ;;  %vm1037_vm14 = vcmp.eq.s32.totalorder %v1826_v59, %v2019_v58 }
  0x74   : > { %v382_v39 = vmul.f32 %v1437_v0, %v1929_v56  ;;  %vm386_vm5 = vmand %vm1977_vm6, %vm352_vm1  ;;  %v548_v10 = vsel %vm476_vm3, %v1954_v17, 0.0  ;;  %vm620_vm9 = vcmp.eq.s32.totalorder %v1826_v59, %v1992_v46  ;;  %vm828_vm7 = vcmp.eq.s32.totalorder %v1826_v59, %v2008_v52 }
  0x75   : > { %vm387_vm0 = vmand %vm385_vm10, %vm355_vm2  ;;  %v2054_v55 = vrot.slane %v381_v1, %v1817_v9  ;;  %v692_v56 = vsel %vm620_vm9, %v1998_v48, 0.0  ;;  %vm1036_vm11 = vcmp.eq.s32.totalorder %v1826_v59, %v2014_v54  ;;  %vm475_vm1 = vcmp.eq.s32.totalorder %v1829_v60, %v1982_v40 }
  0x76   : > { %vm388_vm6 = vmand %vm386_vm5, %vm356_vm4  ;;  %v1438_v11 = vsel %vm387_vm0, 1.0, %v1669_v57  ;;  %v2065_v20 = vrot.slane %v382_v39, %v1817_v9  ;;  %v756_v42 = vadd.f32 %v692_v56, %v548_v10  ;;  %v547_v24 = vsel %vm475_vm1, %v1985_v41, 0.0 }
  0x77   : > { %v1439_v26 = vsel %vm388_vm6, 1.0, %v1669_v57  ;;  %v393_v27 = vmul.f32 %v1438_v11, %v1944_v8  ;;  %v900_v25 = vsel %vm828_vm7, %v2054_v55, 0.0  ;;  %vm619_vm2 = vcmp.eq.s32.totalorder %v1829_v60, %v1995_v47 }
  0x78   : > { %v394_v45 = vmul.f32 %v1439_v26, %v1951_v16  ;;  %v901_v28 = vsel %vm829_vm12, %v2065_v20, 0.0  ;;  %v964_v29 = vadd.f32 %v900_v25, %v756_v42  ;;  %v691_v32 = vsel %vm619_vm2, %v2005_v51, 0.0 }
  0x79   : > { %v2080_v34 = vrot.slane %v393_v27, %v1817_v9  ;;  %v965_v57 = vadd.f32 %v901_v28, %v757_v7  ;;  %v755_v8 = vadd.f32 %v691_v32, %v547_v24  ;;  %vm827_vm4 = vcmp.eq.s32.totalorder %v1829_v60, %v2011_v53 }
  0x7a   : > { %v2085_v37 = vrot.slane %v394_v45, %v1817_v9  ;;  %v899_v16 = vsel %vm827_vm4, %v2065_v20, 0.0  ;;  %vm1035_vm13 = vcmp.eq.s32.totalorder %v1829_v60, %v2019_v58  ;;  %vm474_vm15 = vcmp.eq.s32.totalorder %v1829_v60, %v1973_v33 }
  0x7b   : > { %v1108_v38 = vsel %vm1036_vm11, %v2080_v34, 0.0  ;;  %v963_v44 = vadd.f32 %v899_v16, %v755_v8  ;;  %v546_v62 = vsel %vm474_vm15, %v1954_v17, 0.0  ;;  %vm618_vm3 = vcmp.eq.s32.totalorder %v1829_v60, %v1992_v46 }
  0x7c   : > { %v1109_v9 = vsel %vm1037_vm14, %v2085_v37, 0.0  ;;  %v1172_v36 = vadd.f32 %v1108_v38, %v964_v29  ;;  %v1107_v63 = vsel %vm1035_vm13, %v2085_v37, 0.0  ;;  %v690_v0 = vsel %vm618_vm3, %v1998_v48, 0.0 }
  0x7d   : > { %v1173_v1 = vadd.f32 %v1109_v9, %v965_v57  ;;  %v1171_v7 = vadd.f32 %v1107_v63, %v963_v44  ;;  %v754_v39 = vadd.f32 %v690_v0, %v546_v62  ;;  %vm826_vm8 = vcmp.eq.s32.totalorder %v1829_v60, %v2008_v52 }
  0x7e   : > { %v898_v10 = vsel %vm826_vm8, %v2054_v55, 0.0  ;;  %vm1034_vm12 = vcmp.eq.s32.totalorder %v1829_v60, %v2014_v54  ;;  %vm473_vm10 = vcmp.eq.s32.totalorder %v1832_v61, %v1982_v40  ;;  %vm617_vm14 = vcmp.eq.s32.totalorder %v1832_v61, %v1995_v47 }
  0x7f   : > { %1210 = vmatprep.subr.mxu0 %v1173_v1  ;;  %v962_v59 = vadd.f32 %v898_v10, %v754_v39  ;;  %v1106_v56 = vsel %vm1034_vm12, %v2080_v34, 0.0  ;;  %v545_v11 = vsel %vm473_vm10, %v1985_v41, 0.0  ;;  %v689_v42 = vsel %vm617_vm14, %v2005_v51, 0.0 }
  0x80   : > { %1211 = vmatpush1.msra.mxu0 %v1172_v36  ;;  %v753_v24 = vadd.f32 %v689_v42, %v545_v11  ;;  %vm825_vm5 = vcmp.eq.s32.totalorder %v1832_v61, %v2011_v53  ;;  %vm1033_vm9 = vcmp.eq.s32.totalorder %v1832_v61, %v2019_v58  ;;  %vm472_vm7 = vcmp.eq.s32.totalorder %v1832_v61, %v1973_v33 }
  0x81   : > { %1212 = vmatprep.subr.mxu0 %v1171_v7  ;;  %v1170_v60 = vadd.f32 %v1106_v56, %v962_v59  ;;  %v897_v26 = vsel %vm825_vm5, %v2065_v20, 0.0  ;;  %v1105_v27 = vsel %vm1033_vm9, %v2085_v37, 0.0  ;;  %v544_v25 = vsel %vm472_vm7, %v1954_v17, 0.0 }
  0x82   : > { %v961_v45 = vadd.f32 %v897_v26, %v753_v24  ;;  %vm616_vm0 = vcmp.eq.s32.totalorder %v1832_v61, %v1992_v46  ;;  %vm824_vm11 = vcmp.eq.s32.totalorder %v1832_v61, %v2008_v52  ;;  %vm1032_vm1 = vcmp.eq.s32.totalorder %v1832_v61, %v2014_v54 }
  0x83   : > { %1213 = vmatpush1.msra.mxu0 %v1170_v60  ;;  %v688_v28 = vsel %vm616_vm0, %v1998_v48, 0.0  ;;  %v896_v29 = vsel %vm824_vm11, %v2054_v55, 0.0  ;;  %v1104_v32 = vsel %vm1032_vm1, %v2080_v34, 0.0  ;;  %vm471_vm6 = vcmp.eq.s32.totalorder %v1835_v2, %v1982_v40 }
  0x84   : > { %v1169_v57 = vadd.f32 %v1105_v27, %v961_v45  ;;  %v752_v8 = vadd.f32 %v688_v28, %v544_v25  ;;  %v543_v16 = vsel %vm471_vm6, %v1985_v41, 0.0  ;;  %vm615_vm2 = vcmp.eq.s32.totalorder %v1835_v2, %v1995_v47 }
  0x85   : > { %v687_v38 = vsel %vm615_vm2, %v2005_v51, 0.0  ;;  %vm823_vm4 = vcmp.eq.s32.totalorder %v1835_v2, %v2011_v53  ;;  %vm1031_vm13 = vcmp.eq.s32.totalorder %v1835_v2, %v2019_v58  ;;  %vm470_vm15 = vcmp.eq.s32.totalorder %v1835_v2, %v1973_v33 }
  0x86   : > { %1214 = vmatprep.subr.mxu0 %v1169_v57  ;;  %v960_v61 = vadd.f32 %v896_v29, %v752_v8  ;;  %v751_v44 = vadd.f32 %v687_v38, %v543_v16  ;;  %v895_v62 = vsel %vm823_vm4, %v2065_v20, 0.0  ;;  %v1103_v9 = vsel %vm1031_vm13, %v2085_v37, 0.0 }
  0x87   : > { %v542_v36 = vsel %vm470_vm15, %v1954_v17, 0.0  ;;  %vm614_vm3 = vcmp.eq.s32.totalorder %v1835_v2, %v1992_v46  ;;  %vm822_vm8 = vcmp.eq.s32.totalorder %v1835_v2, %v2008_v52  ;;  %vm1030_vm12 = vcmp.eq.s32.totalorder %v1835_v2, %v2014_v54 }
  0x88   : > { %v1168_v63 = vadd.f32 %v1104_v32, %v960_v61  ;;  %v959_v0 = vadd.f32 %v895_v62, %v751_v44  ;;  %v686_v1 = vsel %vm614_vm3, %v1998_v48, 0.0  ;;  %v894_v7 = vsel %vm822_vm8, %v2054_v55, 0.0 }
  0x89   : > { %v750_v39 = vadd.f32 %v686_v1, %v542_v36  ;;  %v1102_v10 = vsel %vm1030_vm12, %v2080_v34, 0.0  ;;  %vm469_vm10 = vcmp.eq.s32.totalorder %v1838_v3, %v1982_v40  ;;  %vm613_vm14 = vcmp.eq.s32.totalorder %v1838_v3, %v1995_v47 }
  0x8a   : > { %1215 = vmatpush1.msra.mxu0 %v1168_v63  ;;  %v1167_v59 = vadd.f32 %v1103_v9, %v959_v0  ;;  %v541_v56 = vsel %vm469_vm10, %v1985_v41, 0.0  ;;  %v685_v2 = vsel %vm613_vm14, %v2005_v51, 0.0  ;;  %vm821_vm5 = vcmp.eq.s32.totalorder %v1838_v3, %v2011_v53 }
  0x8b   : > { %v958_v11 = vadd.f32 %v894_v7, %v750_v39  ;;  %v749_v42 = vadd.f32 %v685_v2, %v541_v56  ;;  %v893_v24 = vsel %vm821_vm5, %v2065_v20, 0.0  ;;  %vm1029_vm9 = vcmp.eq.s32.totalorder %v1838_v3, %v2019_v58 }
  0x8c   : > { %1216 = vmatprep.subr.mxu0 %v1167_v59  ;;  %v1101_v60 = vsel %vm1029_vm9, %v2085_v37, 0.0  ;;  %vm468_vm7 = vcmp.eq.s32.totalorder %v1838_v3, %v1973_v33  ;;  %vm612_vm0 = vcmp.eq.s32.totalorder %v1838_v3, %v1992_v46  ;;  %vm820_vm11 = vcmp.eq.s32.totalorder %v1838_v3, %v2008_v52 }
  0x8d   : > { %v1166_v26 = vadd.f32 %v1102_v10, %v958_v11  ;;  %v957_v27 = vadd.f32 %v893_v24, %v749_v42  ;;  %v540_v25 = vsel %vm468_vm7, %v1954_v17, 0.0  ;;  %v684_v45 = vsel %vm612_vm0, %v1998_v48, 0.0 }
  0x8e   : > { %v748_v28 = vadd.f32 %v684_v45, %v540_v25  ;;  %v892_v29 = vsel %vm820_vm11, %v2054_v55, 0.0  ;;  %vm1028_vm1 = vcmp.eq.s32.totalorder %v1838_v3, %v2014_v54  ;;  %vm467_vm6 = vcmp.eq.s32.totalorder %v1841_v5, %v1982_v40 }
  0x8f   : > { %1217 = vmatpush1.msra.mxu0 %v1166_v26  ;;  %v1165_v32 = vadd.f32 %v1101_v60, %v957_v27  ;;  %v1100_v57 = vsel %vm1028_vm1, %v2080_v34, 0.0  ;;  %v539_v8 = vsel %vm467_vm6, %v1985_v41, 0.0  ;;  %vm611_vm2 = vcmp.eq.s32.totalorder %v1841_v5, %v1995_v47 }
  0x90   : > { %v956_v16 = vadd.f32 %v892_v29, %v748_v28  ;;  %v683_v38 = vsel %vm611_vm2, %v2005_v51, 0.0  ;;  %vm819_vm4 = vcmp.eq.s32.totalorder %v1841_v5, %v2011_v53  ;;  %vm1027_vm13 = vcmp.eq.s32.totalorder %v1841_v5, %v2019_v58 }
  0x91   : > { %1218 = vmatprep.subr.mxu0 %v1165_v32  ;;  %v747_v3 = vadd.f32 %v683_v38, %v539_v8  ;;  %v891_v61 = vsel %vm819_vm4, %v2065_v20, 0.0  ;;  %v1099_v44 = vsel %vm1027_vm13, %v2085_v37, 0.0  ;;  %vm466_vm15 = vcmp.eq.s32.totalorder %v1841_v5, %v1973_v33 }
  0x92   : > { %v1164_v62 = vadd.f32 %v1100_v57, %v956_v16  ;;  %v538_v9 = vsel %vm466_vm15, %v1954_v17, 0.0  ;;  %vm610_vm3 = vcmp.eq.s32.totalorder %v1841_v5, %v1992_v46  ;;  %vm818_vm8 = vcmp.eq.s32.totalorder %v1841_v5, %v2008_v52 }
  0x93   : > { %v955_v36 = vadd.f32 %v891_v61, %v747_v3  ;;  %v682_v63 = vsel %vm610_vm3, %v1998_v48, 0.0  ;;  %v890_v0 = vsel %vm818_vm8, %v2054_v55, 0.0  ;;  %vm1026_vm12 = vcmp.eq.s32.totalorder %v1841_v5, %v2014_v54 }
  0x94   : > { %1219 = vmatpush1.msra.mxu0 %v1164_v62  ;;  %v746_v1 = vadd.f32 %v682_v63, %v538_v9  ;;  %v1098_v7 = vsel %vm1026_vm12, %v2080_v34, 0.0  ;;  %vm465_vm10 = vcmp.eq.s32.totalorder %v1844_v6, %v1982_v40  ;;  %vm609_vm14 = vcmp.eq.s32.totalorder %v1844_v6, %v1995_v47 }
  0x95   : > { %v1163_v39 = vadd.f32 %v1099_v44, %v955_v36  ;;  %v537_v10 = vsel %vm465_vm10, %v1985_v41, 0.0  ;;  %v681_v59 = vsel %vm609_vm14, %v2005_v51, 0.0  ;;  %vm817_vm5 = vcmp.eq.s32.totalorder %v1844_v6, %v2011_v53 }
  0x96   : > { %v954_v56 = vadd.f32 %v890_v0, %v746_v1  ;;  %v745_v5 = vadd.f32 %v681_v59, %v537_v10  ;;  %v889_v2 = vsel %vm817_vm5, %v2065_v20, 0.0  ;;  %vm1025_vm9 = vcmp.eq.s32.totalorder %v1844_v6, %v2019_v58 }
  0x97   : > { %1220 = vmatprep.subr.mxu0 %v1163_v39  ;;  %v1097_v11 = vsel %vm1025_vm9, %v2085_v37, 0.0  ;;  %vm464_vm7 = vcmp.eq.s32.totalorder %v1844_v6, %v1973_v33  ;;  %vm608_vm0 = vcmp.eq.s32.totalorder %v1844_v6, %v1992_v46  ;;  %vm816_vm11 = vcmp.eq.s32.totalorder %v1844_v6, %v2008_v52 }
  0x98   : > { %v1162_v42 = vadd.f32 %v1098_v7, %v954_v56  ;;  %v953_v24 = vadd.f32 %v889_v2, %v745_v5  ;;  %v536_v60 = vsel %vm464_vm7, %v1954_v17, 0.0  ;;  %v680_v26 = vsel %vm608_vm0, %v1998_v48, 0.0 }
  0x99   : > { %v744_v27 = vadd.f32 %v680_v26, %v536_v60  ;;  %v888_v25 = vsel %vm816_vm11, %v2054_v55, 0.0  ;;  %vm1024_vm1 = vcmp.eq.s32.totalorder %v1844_v6, %v2014_v54  ;;  %vm463_vm6 = vcmp.eq.s32.totalorder %v1847_v12, %v1982_v40 }
  0x9a   : > { %1221 = vmatpush1.msra.mxu0 %v1162_v42  ;;  %v1161_v45 = vadd.f32 %v1097_v11, %v953_v24  ;;  %v1096_v28 = vsel %vm1024_vm1, %v2080_v34, 0.0  ;;  %v535_v29 = vsel %vm463_vm6, %v1985_v41, 0.0  ;;  %vm607_vm2 = vcmp.eq.s32.totalorder %v1847_v12, %v1995_v47 }
  0x9b   : > { %v952_v32 = vadd.f32 %v888_v25, %v744_v27  ;;  %v679_v57 = vsel %vm607_vm2, %v2005_v51, 0.0  ;;  %vm815_vm4 = vcmp.eq.s32.totalorder %v1847_v12, %v2011_v53  ;;  %vm1023_vm13 = vcmp.eq.s32.totalorder %v1847_v12, %v2019_v58 }
  0x9c   : > { %1222 = vmatprep.subr.mxu0 %v1161_v45  ;;  %v743_v6 = vadd.f32 %v679_v57, %v535_v29  ;;  %v887_v8 = vsel %vm815_vm4, %v2065_v20, 0.0  ;;  %v1095_v16 = vsel %vm1023_vm13, %v2085_v37, 0.0  ;;  %vm462_vm15 = vcmp.eq.s32.totalorder %v1847_v12, %v1973_v33 }
  0x9d   : > { %v1160_v38 = vadd.f32 %v1096_v28, %v952_v32  ;;  %v534_v3 = vsel %vm462_vm15, %v1954_v17, 0.0  ;;  %vm606_vm3 = vcmp.eq.s32.totalorder %v1847_v12, %v1992_v46  ;;  %vm814_vm8 = vcmp.eq.s32.totalorder %v1847_v12, %v2008_v52 }
  0x9e   : > { %v951_v61 = vadd.f32 %v887_v8, %v743_v6  ;;  %v678_v44 = vsel %vm606_vm3, %v1998_v48, 0.0  ;;  %v886_v62 = vsel %vm814_vm8, %v2054_v55, 0.0  ;;  %vm1022_vm12 = vcmp.eq.s32.totalorder %v1847_v12, %v2014_v54 }
  0x9f   : > { %1223 = vmatpush1.msra.mxu0 %v1160_v38  ;;  %v742_v9 = vadd.f32 %v678_v44, %v534_v3  ;;  %v1094_v36 = vsel %vm1022_vm12, %v2080_v34, 0.0  ;;  %vm461_vm10 = vcmp.eq.s32.totalorder %v1850_v13, %v1982_v40  ;;  %vm605_vm14 = vcmp.eq.s32.totalorder %v1850_v13, %v1995_v47 }
  0xa0   : > { %v1159_v63 = vadd.f32 %v1095_v16, %v951_v61  ;;  %v533_v0 = vsel %vm461_vm10, %v1985_v41, 0.0  ;;  %v677_v1 = vsel %vm605_vm14, %v2005_v51, 0.0  ;;  %vm813_vm5 = vcmp.eq.s32.totalorder %v1850_v13, %v2011_v53 }
  0xa1   : > { %v950_v7 = vadd.f32 %v886_v62, %v742_v9  ;;  %v741_v12 = vadd.f32 %v677_v1, %v533_v0  ;;  %v885_v39 = vsel %vm813_vm5, %v2065_v20, 0.0  ;;  %vm1021_vm9 = vcmp.eq.s32.totalorder %v1850_v13, %v2019_v58 }
  0xa2   : > { %1224 = vmatprep.subr.mxu0 %v1159_v63  ;;  %v1093_v10 = vsel %vm1021_vm9, %v2085_v37, 0.0  ;;  %vm460_vm7 = vcmp.eq.s32.totalorder %v1850_v13, %v1973_v33  ;;  %vm604_vm0 = vcmp.eq.s32.totalorder %v1850_v13, %v1992_v46  ;;  %vm812_vm11 = vcmp.eq.s32.totalorder %v1850_v13, %v2008_v52 }
  0xa3   : > { %v1158_v59 = vadd.f32 %v1094_v36, %v950_v7  ;;  %v949_v56 = vadd.f32 %v885_v39, %v741_v12  ;;  %v532_v5 = vsel %vm460_vm7, %v1954_v17, 0.0  ;;  %v676_v2 = vsel %vm604_vm0, %v1998_v48, 0.0 }
  0xa4   : > { %v740_v11 = vadd.f32 %v676_v2, %v532_v5  ;;  %v884_v42 = vsel %vm812_vm11, %v2054_v55, 0.0  ;;  %vm1020_vm1 = vcmp.eq.s32.totalorder %v1850_v13, %v2014_v54  ;;  %vm459_vm6 = vcmp.eq.s32.totalorder %v1853_v14, %v1982_v40 }
  0xa5   : > { %1225 = vmatpush1.msra.mxu0 %v1158_v59  ;;  %v1157_v24 = vadd.f32 %v1093_v10, %v949_v56  ;;  %v1092_v60 = vsel %vm1020_vm1, %v2080_v34, 0.0  ;;  %v531_v26 = vsel %vm459_vm6, %v1985_v41, 0.0  ;;  %vm603_vm2 = vcmp.eq.s32.totalorder %v1853_v14, %v1995_v47 }
  0xa6   : > { %v948_v27 = vadd.f32 %v884_v42, %v740_v11  ;;  %v675_v25 = vsel %vm603_vm2, %v2005_v51, 0.0  ;;  %vm811_vm4 = vcmp.eq.s32.totalorder %v1853_v14, %v2011_v53  ;;  %vm1019_vm13 = vcmp.eq.s32.totalorder %v1853_v14, %v2019_v58 }
  0xa7   : > { %1226 = vmatprep.subr.mxu0 %v1157_v24  ;;  %v739_v13 = vadd.f32 %v675_v25, %v531_v26  ;;  %v883_v45 = vsel %vm811_vm4, %v2065_v20, 0.0  ;;  %v1091_v28 = vsel %vm1019_vm13, %v2085_v37, 0.0  ;;  %vm458_vm15 = vcmp.eq.s32.totalorder %v1853_v14, %v1973_v33 }
  0xa8   : > { %v1156_v29 = vadd.f32 %v1092_v60, %v948_v27  ;;  %v530_v32 = vsel %vm458_vm15, %v1954_v17, 0.0  ;;  %vm602_vm3 = vcmp.eq.s32.totalorder %v1853_v14, %v1992_v46  ;;  %vm810_vm8 = vcmp.eq.s32.totalorder %v1853_v14, %v2008_v52 }
  0xa9   : > { %v947_v57 = vadd.f32 %v883_v45, %v739_v13  ;;  %v674_v6 = vsel %vm602_vm3, %v1998_v48, 0.0  ;;  %v882_v8 = vsel %vm810_vm8, %v2054_v55, 0.0  ;;  %vm1018_vm12 = vcmp.eq.s32.totalorder %v1853_v14, %v2014_v54 }
  0xaa   : > { %1227 = vmatpush1.msra.mxu0 %v1156_v29  ;;  %v738_v16 = vadd.f32 %v674_v6, %v530_v32  ;;  %v1090_v38 = vsel %vm1018_vm12, %v2080_v34, 0.0  ;;  %vm457_vm10 = vcmp.eq.s32.totalorder %v1856_v15, %v1982_v40  ;;  %vm601_vm14 = vcmp.eq.s32.totalorder %v1856_v15, %v1995_v47 }
  0xab   : > { %v1155_v3 = vadd.f32 %v1091_v28, %v947_v57  ;;  %v529_v61 = vsel %vm457_vm10, %v1985_v41, 0.0  ;;  %v673_v44 = vsel %vm601_vm14, %v2005_v51, 0.0  ;;  %vm809_vm5 = vcmp.eq.s32.totalorder %v1856_v15, %v2011_v53 }
  0xac   : > { %v946_v62 = vadd.f32 %v882_v8, %v738_v16  ;;  %v737_v14 = vadd.f32 %v673_v44, %v529_v61  ;;  %v881_v9 = vsel %vm809_vm5, %v2065_v20, 0.0  ;;  %vm1017_vm9 = vcmp.eq.s32.totalorder %v1856_v15, %v2019_v58 }
  0xad   : > { %1228 = vmatprep.subr.mxu0 %v1155_v3  ;;  %v1089_v36 = vsel %vm1017_vm9, %v2085_v37, 0.0  ;;  %vm456_vm7 = vcmp.eq.s32.totalorder %v1856_v15, %v1973_v33  ;;  %vm600_vm0 = vcmp.eq.s32.totalorder %v1856_v15, %v1992_v46  ;;  %vm808_vm11 = vcmp.eq.s32.totalorder %v1856_v15, %v2008_v52 }
  0xae   : > { %v1154_v63 = vadd.f32 %v1090_v38, %v946_v62  ;;  %v945_v0 = vadd.f32 %v881_v9, %v737_v14  ;;  %v528_v1 = vsel %vm456_vm7, %v1954_v17, 0.0  ;;  %v672_v7 = vsel %vm600_vm0, %v1998_v48, 0.0 }
  0xaf   : > { %v736_v12 = vadd.f32 %v672_v7, %v528_v1  ;;  %v880_v39 = vsel %vm808_vm11, %v2054_v55, 0.0  ;;  %vm1016_vm1 = vcmp.eq.s32.totalorder %v1856_v15, %v2014_v54  ;;  %vm455_vm6 = vcmp.eq.s32.totalorder %v1859_v19, %v1982_v40 }
  0xb0   : > { %1229 = vmatpush1.msra.mxu0 %v1154_v63  ;;  %v1153_v10 = vadd.f32 %v1089_v36, %v945_v0  ;;  %v1088_v59 = vsel %vm1016_vm1, %v2080_v34, 0.0  ;;  %v527_v56 = vsel %vm455_vm6, %v1985_v41, 0.0  ;;  %vm599_vm2 = vcmp.eq.s32.totalorder %v1859_v19, %v1995_v47 }
  0xb1   : > { %v944_v5 = vadd.f32 %v880_v39, %v736_v12  ;;  %v671_v2 = vsel %vm599_vm2, %v2005_v51, 0.0  ;;  %vm807_vm4 = vcmp.eq.s32.totalorder %v1859_v19, %v2011_v53  ;;  %vm1015_vm13 = vcmp.eq.s32.totalorder %v1859_v19, %v2019_v58 }
  0xb2   : > { %1230 = vmatprep.subr.mxu0 %v1153_v10  ;;  %v735_v15 = vadd.f32 %v671_v2, %v527_v56  ;;  %v879_v11 = vsel %vm807_vm4, %v2065_v20, 0.0  ;;  %v1087_v42 = vsel %vm1015_vm13, %v2085_v37, 0.0  ;;  %vm454_vm15 = vcmp.eq.s32.totalorder %v1859_v19, %v1973_v33 }
  0xb3   : > { %v1152_v24 = vadd.f32 %v1088_v59, %v944_v5  ;;  %v526_v60 = vsel %vm454_vm15, %v1954_v17, 0.0  ;;  %vm598_vm3 = vcmp.eq.s32.totalorder %v1859_v19, %v1992_v46  ;;  %vm806_vm8 = vcmp.eq.s32.totalorder %v1859_v19, %v2008_v52 }
  0xb4   : > { %v943_v26 = vadd.f32 %v879_v11, %v735_v15  ;;  %v670_v27 = vsel %vm598_vm3, %v1998_v48, 0.0  ;;  %v878_v25 = vsel %vm806_vm8, %v2054_v55, 0.0  ;;  %vm1014_vm12 = vcmp.eq.s32.totalorder %v1859_v19, %v2014_v54 }
  0xb5   : > { %1231 = vmatpush1.msra.mxu0 %v1152_v24  ;;  %v734_v13 = vadd.f32 %v670_v27, %v526_v60  ;;  %v1086_v45 = vsel %vm1014_vm12, %v2080_v34, 0.0  ;;  %vm453_vm10 = vcmp.eq.s32.totalorder %v1864_v22, %v1982_v40  ;;  %vm597_vm14 = vcmp.eq.s32.totalorder %v1864_v22, %v1995_v47 }
  0xb6   : > { %v1151_v28 = vadd.f32 %v1087_v42, %v943_v26  ;;  %v525_v29 = vsel %vm453_vm10, %v1985_v41, 0.0  ;;  %v669_v32 = vsel %vm597_vm14, %v2005_v51, 0.0  ;;  %vm805_vm5 = vcmp.eq.s32.totalorder %v1864_v22, %v2011_v53 }
  0xb7   : > { %v942_v57 = vadd.f32 %v878_v25, %v734_v13  ;;  %v733_v19 = vadd.f32 %v669_v32, %v525_v29  ;;  %v877_v6 = vsel %vm805_vm5, %v2065_v20, 0.0  ;;  %vm1013_vm9 = vcmp.eq.s32.totalorder %v1864_v22, %v2019_v58 }
  0xb8   : > { %1232 = vmatprep.subr.mxu0 %v1151_v28  ;;  %v1085_v8 = vsel %vm1013_vm9, %v2085_v37, 0.0  ;;  %vm452_vm7 = vcmp.eq.s32.totalorder %v1864_v22, %v1973_v33  ;;  %vm596_vm0 = vcmp.eq.s32.totalorder %v1864_v22, %v1992_v46  ;;  %vm804_vm11 = vcmp.eq.s32.totalorder %v1864_v22, %v2008_v52 }
  0xb9   : > { %v1150_v16 = vadd.f32 %v1086_v45, %v942_v57  ;;  %v941_v38 = vadd.f32 %v877_v6, %v733_v19  ;;  %v524_v3 = vsel %vm452_vm7, %v1954_v17, 0.0  ;;  %v668_v61 = vsel %vm596_vm0, %v1998_v48, 0.0 }
  0xba   : > { %v732_v44 = vadd.f32 %v668_v61, %v524_v3  ;;  %v876_v62 = vsel %vm804_vm11, %v2054_v55, 0.0  ;;  %vm1012_vm1 = vcmp.eq.s32.totalorder %v1864_v22, %v2014_v54  ;;  %vm451_vm6 = vcmp.eq.s32.totalorder %v1867_v23, %v1982_v40 }
  0xbb   : > { %1233 = vmatpush1.msra.mxu0 %v1150_v16  ;;  %v1149_v14 = vadd.f32 %v1085_v8, %v941_v38  ;;  %v1084_v9 = vsel %vm1012_vm1, %v2080_v34, 0.0  ;;  %v523_v36 = vsel %vm451_vm6, %v1985_v41, 0.0  ;;  %vm595_vm2 = vcmp.eq.s32.totalorder %v1867_v23, %v1995_v47 }
  0xbc   : > { %v940_v63 = vadd.f32 %v876_v62, %v732_v44  ;;  %v667_v0 = vsel %vm595_vm2, %v2005_v51, 0.0  ;;  %vm803_vm4 = vcmp.eq.s32.totalorder %v1867_v23, %v2011_v53  ;;  %vm1011_vm13 = vcmp.eq.s32.totalorder %v1867_v23, %v2019_v58 }
  0xbd   : > { %1234 = vmatprep.subr.mxu0 %v1149_v14  ;;  %v731_v22 = vadd.f32 %v667_v0, %v523_v36  ;;  %v875_v1 = vsel %vm803_vm4, %v2065_v20, 0.0  ;;  %v1083_v7 = vsel %vm1011_vm13, %v2085_v37, 0.0  ;;  %vm450_vm15 = vcmp.eq.s32.totalorder %v1867_v23, %v1973_v33 }
  0xbe   : > { %v1148_v12 = vadd.f32 %v1084_v9, %v940_v63  ;;  %v522_v39 = vsel %vm450_vm15, %v1954_v17, 0.0  ;;  %vm594_vm3 = vcmp.eq.s32.totalorder %v1867_v23, %v1992_v46  ;;  %vm802_vm8 = vcmp.eq.s32.totalorder %v1867_v23, %v2008_v52 }
  0xbf   : > { %v939_v10 = vadd.f32 %v875_v1, %v731_v22  ;;  %v666_v59 = vsel %vm594_vm3, %v1998_v48, 0.0  ;;  %v874_v56 = vsel %vm802_vm8, %v2054_v55, 0.0  ;;  %vm1010_vm12 = vcmp.eq.s32.totalorder %v1867_v23, %v2014_v54 }
  0xc0   : > { %1235 = vmatpush1.msra.mxu0 %v1148_v12  ;;  %v730_v5 = vadd.f32 %v666_v59, %v522_v39  ;;  %v1082_v2 = vsel %vm1010_vm12, %v2080_v34, 0.0  ;;  %vm449_vm10 = vcmp.eq.s32.totalorder %v1872_v30, %v1982_v40  ;;  %vm593_vm14 = vcmp.eq.s32.totalorder %v1872_v30, %v1995_v47 }
  0xc1   : > { %v1147_v15 = vadd.f32 %v1083_v7, %v939_v10  ;;  %v521_v11 = vsel %vm449_vm10, %v1985_v41, 0.0  ;;  %v665_v42 = vsel %vm593_vm14, %v2005_v51, 0.0  ;;  %vm801_vm5 = vcmp.eq.s32.totalorder %v1872_v30, %v2011_v53 }
  0xc2   : > { %v938_v24 = vadd.f32 %v874_v56, %v730_v5  ;;  %v729_v23 = vadd.f32 %v665_v42, %v521_v11  ;;  %v873_v60 = vsel %vm801_vm5, %v2065_v20, 0.0  ;;  %vm1009_vm9 = vcmp.eq.s32.totalorder %v1872_v30, %v2019_v58 }
  0xc3   : > { %1236 = vmatprep.subr.mxu0 %v1147_v15  ;;  %v1081_v26 = vsel %vm1009_vm9, %v2085_v37, 0.0  ;;  %vm448_vm7 = vcmp.eq.s32.totalorder %v1872_v30, %v1973_v33  ;;  %vm592_vm0 = vcmp.eq.s32.totalorder %v1872_v30, %v1992_v46  ;;  %vm800_vm11 = vcmp.eq.s32.totalorder %v1872_v30, %v2008_v52 }
  0xc4   : > { %v1146_v27 = vadd.f32 %v1082_v2, %v938_v24  ;;  %v937_v25 = vadd.f32 %v873_v60, %v729_v23  ;;  %v520_v13 = vsel %vm448_vm7, %v1954_v17, 0.0  ;;  %v664_v45 = vsel %vm592_vm0, %v1998_v48, 0.0 }
  0xc5   : > { %v728_v28 = vadd.f32 %v664_v45, %v520_v13  ;;  %v872_v29 = vsel %vm800_vm11, %v2054_v55, 0.0  ;;  %vm1008_vm1 = vcmp.eq.s32.totalorder %v1872_v30, %v2014_v54  ;;  %vm447_vm6 = vcmp.eq.s32.totalorder %v1814_v4, %v1982_v40 }
  0xc6   : > { %1237 = vmatpush1.msra.mxu0 %v1146_v27  ;;  %v1145_v32 = vadd.f32 %v1081_v26, %v937_v25  ;;  %v1080_v57 = vsel %vm1008_vm1, %v2080_v34, 0.0  ;;  %v519_v19 = vsel %vm447_vm6, %v1985_v41, 0.0  ;;  %vm591_vm2 = vcmp.eq.s32.totalorder %v1814_v4, %v1995_v47 }
  0xc7   : > { %v936_v6 = vadd.f32 %v872_v29, %v728_v28  ;;  %v663_v8 = vsel %vm591_vm2, %v2005_v51, 0.0  ;;  %vm799_vm4 = vcmp.eq.s32.totalorder %v1814_v4, %v2011_v53  ;;  %vm1007_vm13 = vcmp.eq.s32.totalorder %v1814_v4, %v2019_v58 }
  0xc8   : > { %1238 = vmatprep.subr.mxu0 %v1145_v32  ;;  %v727_v30 = vadd.f32 %v663_v8, %v519_v19  ;;  %v871_v16 = vsel %vm799_vm4, %v2065_v20, 0.0  ;;  %v1079_v38 = vsel %vm1007_vm13, %v2085_v37, 0.0  ;;  %vm446_vm15 = vcmp.eq.s32.totalorder %v1814_v4, %v1973_v33 }
  0xc9   : > { %v1144_v3 = vadd.f32 %v1080_v57, %v936_v6  ;;  %v518_v61 = vsel %vm446_vm15, %v1954_v17, 0.0  ;;  %vm590_vm3 = vcmp.eq.s32.totalorder %v1814_v4, %v1992_v46  ;;  %vm798_vm8 = vcmp.eq.s32.totalorder %v1814_v4, %v2008_v52 }
  0xca   : > { %v935_v44 = vadd.f32 %v871_v16, %v727_v30  ;;  %v662_v62 = vsel %vm590_vm3, %v1998_v48, 0.0  ;;  %v870_v14 = vsel %vm798_vm8, %v2054_v55, 0.0  ;;  %vm1006_vm12 = vcmp.eq.s32.totalorder %v1814_v4, %v2014_v54 }
  0xcb   : > { %1239 = vmatpush1.msra.mxu0 %v1144_v3  ;;  %v726_v9 = vadd.f32 %v662_v62, %v518_v61  ;;  %v1078_v36 = vsel %vm1006_vm12, %v2080_v34, 0.0  ;;  %vm509_vm10 = vcmp.eq.s32.totalorder %v1875_v31, %v1982_v40  ;;  %vm653_vm14 = vcmp.eq.s32.totalorder %v1875_v31, %v1995_v47 }
  0xcc   : > { %v1143_v63 = vadd.f32 %v1079_v38, %v935_v44  ;;  %v581_v0 = vsel %vm509_vm10, %v1985_v41, 0.0  ;;  %v725_v22 = vsel %vm653_vm14, %v2005_v51, 0.0  ;;  %vm861_vm5 = vcmp.eq.s32.totalorder %v1875_v31, %v2011_v53 }
  0xcd   : > { %v934_v1 = vadd.f32 %v870_v14, %v726_v9  ;;  %v789_v7 = vadd.f32 %v725_v22, %v581_v0  ;;  %v933_v12 = vsel %vm861_vm5, %v2065_v20, 0.0  ;;  %vm1069_vm9 = vcmp.eq.s32.totalorder %v1875_v31, %v2019_v58 }
  0xce   : > { %1240 = vmatprep.subr.mxu0 %v1143_v63  ;;  %v1141_v39 = vsel %vm1069_vm9, %v2085_v37, 0.0  ;;  %vm508_vm7 = vcmp.eq.s32.totalorder %v1875_v31, %v1973_v33  ;;  %vm652_vm0 = vcmp.eq.s32.totalorder %v1875_v31, %v1992_v46  ;;  %vm860_vm11 = vcmp.eq.s32.totalorder %v1875_v31, %v2008_v52 }
  0xcf   : > { %v1142_v10 = vadd.f32 %v1078_v36, %v934_v1  ;;  %v997_v59 = vadd.f32 %v933_v12, %v789_v7  ;;  %v580_v56 = vsel %vm508_vm7, %v1954_v17, 0.0  ;;  %v724_v5 = vsel %vm652_vm0, %v1998_v48, 0.0 }
  0xd0   : > { %v788_v2 = vadd.f32 %v724_v5, %v580_v56  ;;  %v932_v15 = vsel %vm860_vm11, %v2054_v55, 0.0  ;;  %vm1068_vm1 = vcmp.eq.s32.totalorder %v1875_v31, %v2014_v54  ;;  %vm507_vm6 = vcmp.eq.s32.totalorder %v1878_v35, %v1982_v40 }
  0xd1   : > { %1241 = vmatpush1.msra.mxu0 %v1142_v10  ;;  %v1205_v11 = vadd.f32 %v1141_v39, %v997_v59  ;;  %v1140_v42 = vsel %vm1068_vm1, %v2080_v34, 0.0  ;;  %v579_v24 = vsel %vm507_vm6, %v1985_v41, 0.0  ;;  %vm651_vm2 = vcmp.eq.s32.totalorder %v1878_v35, %v1995_v47 }
  0xd2   : > { %v996_v23 = vadd.f32 %v932_v15, %v788_v2  ;;  %v723_v60 = vsel %vm651_vm2, %v2005_v51, 0.0  ;;  %vm859_vm4 = vcmp.eq.s32.totalorder %v1878_v35, %v2011_v53  ;;  %vm1067_vm13 = vcmp.eq.s32.totalorder %v1878_v35, %v2019_v58 }
  0xd3   : > { %1242 = vmatprep.subr.mxu0 %v1205_v11  ;;  %v787_v31 = vadd.f32 %v723_v60, %v579_v24  ;;  %v931_v26 = vsel %vm859_vm4, %v2065_v20, 0.0  ;;  %v1139_v27 = vsel %vm1067_vm13, %v2085_v37, 0.0  ;;  %vm506_vm15 = vcmp.eq.s32.totalorder %v1878_v35, %v1973_v33 }
  0xd4   : > { %v1204_v25 = vadd.f32 %v1140_v42, %v996_v23  ;;  %v578_v13 = vsel %vm506_vm15, %v1954_v17, 0.0  ;;  %vm650_vm3 = vcmp.eq.s32.totalorder %v1878_v35, %v1992_v46  ;;  %vm858_vm8 = vcmp.eq.s32.totalorder %v1878_v35, %v2008_v52 }
  0xd5   : > { %v995_v45 = vadd.f32 %v931_v26, %v787_v31  ;;  %v722_v28 = vsel %vm650_vm3, %v1998_v48, 0.0  ;;  %v930_v29 = vsel %vm858_vm8, %v2054_v55, 0.0  ;;  %vm1066_vm12 = vcmp.eq.s32.totalorder %v1878_v35, %v2014_v54 }
  0xd6   : > { %1243 = vmatpush2.msra.mxu0 %v1204_v25  ;;  %v786_v32 = vadd.f32 %v722_v28, %v578_v13  ;;  %v1138_v57 = vsel %vm1066_vm12, %v2080_v34, 0.0  ;;  %vm505_vm10 = vcmp.eq.s32.totalorder %v1890_v43, %v1982_v40  ;;  %vm649_vm14 = vcmp.eq.s32.totalorder %v1890_v43, %v1995_v47 }
  0xd7   : > { %v1203_v19 = vadd.f32 %v1139_v27, %v995_v45  ;;  %v577_v6 = vsel %vm505_vm10, %v1985_v41, 0.0  ;;  %v721_v8 = vsel %vm649_vm14, %v2005_v51, 0.0  ;;  %vm857_vm5 = vcmp.eq.s32.totalorder %v1890_v43, %v2011_v53 }
  0xd8   : > { %v994_v30 = vadd.f32 %v930_v29, %v786_v32  ;;  %v785_v35 = vadd.f32 %v721_v8, %v577_v6  ;;  %v929_v16 = vsel %vm857_vm5, %v2065_v20, 0.0  ;;  %vm1065_vm9 = vcmp.eq.s32.totalorder %v1890_v43, %v2019_v58 }
  0xd9   : > { %1244 = vmatprep.subr.mxu0 %v1203_v19  ;;  %v1137_v38 = vsel %vm1065_vm9, %v2085_v37, 0.0  ;;  %vm504_vm7 = vcmp.eq.s32.totalorder %v1890_v43, %v1973_v33  ;;  %vm648_vm0 = vcmp.eq.s32.totalorder %v1890_v43, %v1992_v46  ;;  %vm856_vm11 = vcmp.eq.s32.totalorder %v1890_v43, %v2008_v52 }
  0xda   : > { %v1202_v3 = vadd.f32 %v1138_v57, %v994_v30  ;;  %v993_v61 = vadd.f32 %v929_v16, %v785_v35  ;;  %v576_v44 = vsel %vm504_vm7, %v1954_v17, 0.0  ;;  %v720_v62 = vsel %vm648_vm0, %v1998_v48, 0.0 }
  0xdb   : > { %v784_v14 = vadd.f32 %v720_v62, %v576_v44  ;;  %v928_v9 = vsel %vm856_vm11, %v2054_v55, 0.0  ;;  %vm1064_vm1 = vcmp.eq.s32.totalorder %v1890_v43, %v2014_v54  ;;  %vm503_vm6 = vcmp.eq.s32.totalorder %v1907_v49, %v1982_v40 }
  0xdc   : > { %1245 = vmatpush2.msra.mxu0 %v1202_v3  ;;  %v1201_v36 = vadd.f32 %v1137_v38, %v993_v61  ;;  %v1136_v63 = vsel %vm1064_vm1, %v2080_v34, 0.0  ;;  %v575_v0 = vsel %vm503_vm6, %v1985_v41, 0.0  ;;  %vm647_vm2 = vcmp.eq.s32.totalorder %v1907_v49, %v1995_v47 }
  0xdd   : > { %v992_v22 = vadd.f32 %v928_v9, %v784_v14  ;;  %v719_v1 = vsel %vm647_vm2, %v2005_v51, 0.0  ;;  %vm855_vm4 = vcmp.eq.s32.totalorder %v1907_v49, %v2011_v53  ;;  %vm1063_vm13 = vcmp.eq.s32.totalorder %v1907_v49, %v2019_v58 }
  0xde   : > { %1246 = vmatprep.subr.mxu0 %v1201_v36  ;;  %v783_v43 = vadd.f32 %v719_v1, %v575_v0  ;;  %v927_v7 = vsel %vm855_vm4, %v2065_v20, 0.0  ;;  %v1135_v12 = vsel %vm1063_vm13, %v2085_v37, 0.0  ;;  %vm502_vm15 = vcmp.eq.s32.totalorder %v1907_v49, %v1973_v33 }
  0xdf   : > { %v1200_v39 = vadd.f32 %v1136_v63, %v992_v22  ;;  %v574_v10 = vsel %vm502_vm15, %v1954_v17, 0.0  ;;  %vm646_vm3 = vcmp.eq.s32.totalorder %v1907_v49, %v1992_v46  ;;  %vm854_vm8 = vcmp.eq.s32.totalorder %v1907_v49, %v2008_v52 }
  0xe0   : > { %v991_v59 = vadd.f32 %v927_v7, %v783_v43  ;;  %v718_v56 = vsel %vm646_vm3, %v1998_v48, 0.0  ;;  %v926_v5 = vsel %vm854_vm8, %v2054_v55, 0.0  ;;  %vm1062_vm12 = vcmp.eq.s32.totalorder %v1907_v49, %v2014_v54 }
  0xe1   : > { %1247 = vmatpush2.msra.mxu0 %v1200_v39  ;;  %v782_v2 = vadd.f32 %v718_v56, %v574_v10  ;;  %v1134_v15 = vsel %vm1062_vm12, %v2080_v34, 0.0  ;;  %vm501_vm10 = vcmp.eq.s32.totalorder %v1910_v50, %v1982_v40  ;;  %vm645_vm14 = vcmp.eq.s32.totalorder %v1910_v50, %v1995_v47 }
  0xe2   : > { %v1199_v11 = vadd.f32 %v1135_v12, %v991_v59  ;;  %v573_v42 = vsel %vm501_vm10, %v1985_v41, 0.0  ;;  %v717_v24 = vsel %vm645_vm14, %v2005_v51, 0.0  ;;  %vm853_vm5 = vcmp.eq.s32.totalorder %v1910_v50, %v2011_v53 }
  0xe3   : > { %v990_v23 = vadd.f32 %v926_v5, %v782_v2  ;;  %v781_v49 = vadd.f32 %v717_v24, %v573_v42  ;;  %v925_v60 = vsel %vm853_vm5, %v2065_v20, 0.0  ;;  %vm1061_vm9 = vcmp.eq.s32.totalorder %v1910_v50, %v2019_v58 }
  0xe4   : > { %1248 = vmatprep.subr.mxu0 %v1199_v11  ;;  %v1133_v31 = vsel %vm1061_vm9, %v2085_v37, 0.0  ;;  %vm500_vm7 = vcmp.eq.s32.totalorder %v1910_v50, %v1973_v33  ;;  %vm644_vm0 = vcmp.eq.s32.totalorder %v1910_v50, %v1992_v46  ;;  %vm852_vm11 = vcmp.eq.s32.totalorder %v1910_v50, %v2008_v52 }
  0xe5   : > { %v1198_v26 = vadd.f32 %v1134_v15, %v990_v23  ;;  %v989_v27 = vadd.f32 %v925_v60, %v781_v49  ;;  %v572_v25 = vsel %vm500_vm7, %v1954_v17, 0.0  ;;  %v716_v13 = vsel %vm644_vm0, %v1998_v48, 0.0 }
  0xe6   : > { %v780_v45 = vadd.f32 %v716_v13, %v572_v25  ;;  %v924_v28 = vsel %vm852_vm11, %v2054_v55, 0.0  ;;  %vm1060_vm1 = vcmp.eq.s32.totalorder %v1910_v50, %v2014_v54  ;;  %vm499_vm6 = vcmp.eq.s32.totalorder %v1957_v18, %v1982_v40 }
  0xe7   : > { %1249 = vmatpush2.msra.mxu0 %v1198_v26  ;;  %v1197_v29 = vadd.f32 %v1133_v31, %v989_v27  ;;  %v1132_v32 = vsel %vm1060_vm1, %v2080_v34, 0.0  ;;  %v571_v57 = vsel %vm499_vm6, %v1985_v41, 0.0  ;;  %vm643_vm2 = vcmp.eq.s32.totalorder %v1957_v18, %v1995_v47 }
  0xe8   : > { %v988_v19 = vadd.f32 %v924_v28, %v780_v45  ;;  %v715_v6 = vsel %vm643_vm2, %v2005_v51, 0.0  ;;  %vm851_vm4 = vcmp.eq.s32.totalorder %v1957_v18, %v2011_v53  ;;  %vm1059_vm13 = vcmp.eq.s32.totalorder %v1957_v18, %v2019_v58 }
  0xe9   : > { %1250 = vmatprep.subr.mxu0 %v1197_v29  ;;  %v779_v50 = vadd.f32 %v715_v6, %v571_v57  ;;  %v923_v8 = vsel %vm851_vm4, %v2065_v20, 0.0  ;;  %v1131_v30 = vsel %vm1059_vm13, %v2085_v37, 0.0  ;;  %vm498_vm15 = vcmp.eq.s32.totalorder %v1957_v18, %v1973_v33 }
  0xea   : > { %v1196_v35 = vadd.f32 %v1132_v32, %v988_v19  ;;  %v570_v16 = vsel %vm498_vm15, %v1954_v17, 0.0  ;;  %vm642_vm3 = vcmp.eq.s32.totalorder %v1957_v18, %v1992_v46  ;;  %vm850_vm8 = vcmp.eq.s32.totalorder %v1957_v18, %v2008_v52 }
  0xeb   : > { %v987_v38 = vadd.f32 %v923_v8, %v779_v50  ;;  %v714_v3 = vsel %vm642_vm3, %v1998_v48, 0.0  ;;  %v922_v61 = vsel %vm850_vm8, %v2054_v55, 0.0  ;;  %vm1058_vm12 = vcmp.eq.s32.totalorder %v1957_v18, %v2014_v54 }
  0xec   : > { %1251 = vmatpush2.msra.mxu0 %v1196_v35  ;;  %v778_v44 = vadd.f32 %v714_v3, %v570_v16  ;;  %v1130_v62 = vsel %vm1058_vm12, %v2080_v34, 0.0  ;;  %vm497_vm10 = vcmp.eq.s32.totalorder %v1960_v21, %v1982_v40  ;;  %vm641_vm14 = vcmp.eq.s32.totalorder %v1960_v21, %v1995_v47 }
  0xed   : > { %v1195_v14 = vadd.f32 %v1131_v30, %v987_v38  ;;  %v569_v9 = vsel %vm497_vm10, %v1985_v41, 0.0  ;;  %v713_v36 = vsel %vm641_vm14, %v2005_v51, 0.0  ;;  %vm849_vm5 = vcmp.eq.s32.totalorder %v1960_v21, %v2011_v53 }
  0xee   : > { %v986_v63 = vadd.f32 %v922_v61, %v778_v44  ;;  %v777_v18 = vadd.f32 %v713_v36, %v569_v9  ;;  %v921_v0 = vsel %vm849_vm5, %v2065_v20, 0.0  ;;  %vm1057_vm9 = vcmp.eq.s32.totalorder %v1960_v21, %v2019_v58 }
  0xef   : > { %1252 = vmatprep.subr.mxu0 %v1195_v14  ;;  %v1129_v22 = vsel %vm1057_vm9, %v2085_v37, 0.0  ;;  %vm496_vm7 = vcmp.eq.s32.totalorder %v1960_v21, %v1973_v33  ;;  %vm640_vm0 = vcmp.eq.s32.totalorder %v1960_v21, %v1992_v46  ;;  %vm848_vm11 = vcmp.eq.s32.totalorder %v1960_v21, %v2008_v52 }
  0xf0   : > { %v1194_v1 = vadd.f32 %v1130_v62, %v986_v63  ;;  %v985_v43 = vadd.f32 %v921_v0, %v777_v18  ;;  %v568_v7 = vsel %vm496_vm7, %v1954_v17, 0.0  ;;  %v712_v12 = vsel %vm640_vm0, %v1998_v48, 0.0 }
  0xf1   : > { %v776_v39 = vadd.f32 %v712_v12, %v568_v7  ;;  %v920_v10 = vsel %vm848_vm11, %v2054_v55, 0.0  ;;  %vm1056_vm1 = vcmp.eq.s32.totalorder %v1960_v21, %v2014_v54  ;;  %v430_v59 = vadd.s32 192, %v1814_v4 }
  0xf2   : > { %1253 = vmatpush2.msra.mxu0 %v1194_v1  ;;  %v1193_v56 = vadd.f32 %v1129_v22, %v985_v43  ;;  %v1128_v5 = vsel %vm1056_vm1, %v2080_v34, 0.0  ;;  %v429_v2 = vadd.s32 184, %v1814_v4  ;;  %v2618_v15 = vadd.s32 176, %v1814_v4 }
  0xf3   : > { %v984_v11 = vadd.f32 %v920_v10, %v776_v39  ;;  %vm495_vm6 = vcmp.eq.s32.totalorder %v430_v59, %v1982_v40  ;;  %vm639_vm2 = vcmp.eq.s32.totalorder %v430_v59, %v1995_v47  ;;  %vm847_vm4 = vcmp.eq.s32.totalorder %v430_v59, %v2011_v53 }
  0xf4   : > { %1254 = vmatprep.subr.mxu0 %v1193_v56  ;;  %v567_v21 = vsel %vm495_vm6, %v1985_v41, 0.0  ;;  %v711_v42 = vsel %vm639_vm2, %v2005_v51, 0.0  ;;  %v919_v24 = vsel %vm847_vm4, %v2065_v20, 0.0  ;;  %vm1055_vm13 = vcmp.eq.s32.totalorder %v430_v59, %v2019_v58 }
  0xf5   : > { %v1192_v23 = vadd.f32 %v1128_v5, %v984_v11  ;;  %v775_v49 = vadd.f32 %v711_v42, %v567_v21  ;;  %v1127_v60 = vsel %vm1055_vm13, %v2085_v37, 0.0  ;;  %vm494_vm15 = vcmp.eq.s32.totalorder %v430_v59, %v1973_v33 }
  0xf6   : > { %v566_v31 = vsel %vm494_vm15, %v1954_v17, 0.0  ;;  %vm638_vm3 = vcmp.eq.s32.totalorder %v430_v59, %v1992_v46  ;;  %vm846_vm8 = vcmp.eq.s32.totalorder %v430_v59, %v2008_v52  ;;  %vm1054_vm12 = vcmp.eq.s32.totalorder %v430_v59, %v2014_v54 }
  0xf7   : > { %1255 = vmatpush2.msra.mxu0 %v1192_v23  ;;  %v983_v26 = vadd.f32 %v919_v24, %v775_v49  ;;  %v710_v27 = vsel %vm638_vm3, %v1998_v48, 0.0  ;;  %v918_v25 = vsel %vm846_vm8, %v2054_v55, 0.0  ;;  %v1126_v13 = vsel %vm1054_vm12, %v2080_v34, 0.0 }
  0xf8   : > { %v774_v45 = vadd.f32 %v710_v27, %v566_v31  ;;  %vm493_vm10 = vcmp.eq.s32.totalorder %v429_v2, %v1982_v40  ;;  %vm637_vm14 = vcmp.eq.s32.totalorder %v429_v2, %v1995_v47  ;;  %vm845_vm5 = vcmp.eq.s32.totalorder %v429_v2, %v2011_v53 }
  0xf9   : > { %v1191_v28 = vadd.f32 %v1127_v60, %v983_v26  ;;  %v565_v29 = vsel %vm493_vm10, %v1985_v41, 0.0  ;;  %v709_v32 = vsel %vm637_vm14, %v2005_v51, 0.0  ;;  %v917_v57 = vsel %vm845_vm5, %v2065_v20, 0.0 }
  0xfa   : > { %v982_v19 = vadd.f32 %v918_v25, %v774_v45  ;;  %v773_v6 = vadd.f32 %v709_v32, %v565_v29  ;;  %vm1053_vm9 = vcmp.eq.s32.totalorder %v429_v2, %v2019_v58  ;;  %vm492_vm7 = vcmp.eq.s32.totalorder %v429_v2, %v1973_v33 }
  0xfb   : > { %1256 = vmatprep.subr.mxu0 %v1191_v28  ;;  %v1125_v50 = vsel %vm1053_vm9, %v2085_v37, 0.0  ;;  %v564_v8 = vsel %vm492_vm7, %v1954_v17, 0.0  ;;  %vm636_vm0 = vcmp.eq.s32.totalorder %v429_v2, %v1992_v46  ;;  %vm844_vm11 = vcmp.eq.s32.totalorder %v429_v2, %v2008_v52 }
  0xfc   : > { %v1190_v30 = vadd.f32 %v1126_v13, %v982_v19  ;;  %v981_v35 = vadd.f32 %v917_v57, %v773_v6  ;;  %v708_v16 = vsel %vm636_vm0, %v1998_v48, 0.0  ;;  %v916_v38 = vsel %vm844_vm11, %v2054_v55, 0.0 }
  0xfd   : > { %v772_v3 = vadd.f32 %v708_v16, %v564_v8  ;;  %vm1052_vm1 = vcmp.eq.s32.totalorder %v429_v2, %v2014_v54  ;;  %vm491_vm6 = vcmp.eq.s32.totalorder %v2618_v15, %v1982_v40  ;;  %vm635_vm2 = vcmp.eq.s32.totalorder %v2618_v15, %v1995_v47 }
  0xfe   : > { %1257 = vmatpush2.msra.mxu0 %v1190_v30  ;;  %v1189_v61 = vadd.f32 %v1125_v50, %v981_v35  ;;  %v1124_v44 = vsel %vm1052_vm1, %v2080_v34, 0.0  ;;  %v563_v62 = vsel %vm491_vm6, %v1985_v41, 0.0  ;;  %v707_v14 = vsel %vm635_vm2, %v2005_v51, 0.0 }
  0xff   : > { %v980_v9 = vadd.f32 %v916_v38, %v772_v3  ;;  %v771_v36 = vadd.f32 %v707_v14, %v563_v62  ;;  %vm843_vm4 = vcmp.eq.s32.totalorder %v2618_v15, %v2011_v53  ;;  %vm1051_vm13 = vcmp.eq.s32.totalorder %v2618_v15, %v2019_v58 }
 0x100   : > { %1258 = vmatprep.subr.mxu0 %v1189_v61  ;;  %v915_v63 = vsel %vm843_vm4, %v2065_v20, 0.0  ;;  %v1123_v18 = vsel %vm1051_vm13, %v2085_v37, 0.0  ;;  %vm490_vm15 = vcmp.eq.s32.totalorder %v2618_v15, %v1973_v33  ;;  %vm634_vm3 = vcmp.eq.s32.totalorder %v2618_v15, %v1992_v46 }
 0x101   : > { %v1188_v0 = vadd.f32 %v1124_v44, %v980_v9  ;;  %v979_v22 = vadd.f32 %v915_v63, %v771_v36  ;;  %v562_v1 = vsel %vm490_vm15, %v1954_v17, 0.0  ;;  %v706_v43 = vsel %vm634_vm3, %v1998_v48, 0.0 }
 0x102   : > { %v770_v7 = vadd.f32 %v706_v43, %v562_v1  ;;  %vm842_vm8 = vcmp.eq.s32.totalorder %v2618_v15, %v2008_v52  ;;  %vm1050_vm12 = vcmp.eq.s32.totalorder %v2618_v15, %v2014_v54  ;;  %v427_v12 = vadd.s32 168, %v1814_v4 }
 0x103   : > { %1259 = vmatpush2.msra.mxu0 %v1188_v0  ;;  %v1187_v39 = vadd.f32 %v1123_v18, %v979_v22  ;;  %v914_v10 = vsel %vm842_vm8, %v2054_v55, 0.0  ;;  %v1122_v59 = vsel %vm1050_vm12, %v2080_v34, 0.0  ;;  %v426_v56 = vadd.s32 160, %v1814_v4 }
 0x104   : > { %v978_v5 = vadd.f32 %v914_v10, %v770_v7  ;;  %vm489_vm10 = vcmp.eq.s32.totalorder %v427_v12, %v1982_v40  ;;  %vm633_vm14 = vcmp.eq.s32.totalorder %v427_v12, %v1995_v47  ;;  %vm841_vm5 = vcmp.eq.s32.totalorder %v427_v12, %v2011_v53 }
 0x105   : > { %1260 = vmatprep.subr.mxu0 %v1187_v39  ;;  %v561_v2 = vsel %vm489_vm10, %v1985_v41, 0.0  ;;  %v705_v15 = vsel %vm633_vm14, %v2005_v51, 0.0  ;;  %v913_v11 = vsel %vm841_vm5, %v2065_v20, 0.0  ;;  %vm1049_vm9 = vcmp.eq.s32.totalorder %v427_v12, %v2019_v58 }
 0x106   : > { %v1186_v21 = vadd.f32 %v1122_v59, %v978_v5  ;;  %v769_v42 = vadd.f32 %v705_v15, %v561_v2  ;;  %v1121_v24 = vsel %vm1049_vm9, %v2085_v37, 0.0  ;;  %vm488_vm7 = vcmp.eq.s32.totalorder %v427_v12, %v1973_v33 }
 0x107   : > { %v560_v23 = vsel %vm488_vm7, %v1954_v17, 0.0  ;;  %vm632_vm0 = vcmp.eq.s32.totalorder %v427_v12, %v1992_v46  ;;  %vm840_vm11 = vcmp.eq.s32.totalorder %v427_v12, %v2008_v52  ;;  %vm1048_vm1 = vcmp.eq.s32.totalorder %v427_v12, %v2014_v54 }
 0x108   : > { %1261 = vmatpush2.msra.mxu0 %v1186_v21  ;;  %v977_v49 = vadd.f32 %v913_v11, %v769_v42  ;;  %v704_v60 = vsel %vm632_vm0, %v1998_v48, 0.0  ;;  %v912_v31 = vsel %vm840_vm11, %v2054_v55, 0.0  ;;  %v1120_v26 = vsel %vm1048_vm1, %v2080_v34, 0.0 }
 0x109   : > { %v768_v27 = vadd.f32 %v704_v60, %v560_v23  ;;  %vm487_vm6 = vcmp.eq.s32.totalorder %v426_v56, %v1982_v40  ;;  %vm631_vm2 = vcmp.eq.s32.totalorder %v426_v56, %v1995_v47  ;;  %vm839_vm4 = vcmp.eq.s32.totalorder %v426_v56, %v2011_v53 }
 0x10a   : > { %v1185_v25 = vadd.f32 %v1121_v24, %v977_v49  ;;  %v559_v13 = vsel %vm487_vm6, %v1985_v41, 0.0  ;;  %v703_v45 = vsel %vm631_vm2, %v2005_v51, 0.0  ;;  %v911_v28 = vsel %vm839_vm4, %v2065_v20, 0.0 }
 0x10b   : > { %v976_v29 = vadd.f32 %v912_v31, %v768_v27  ;;  %v767_v32 = vadd.f32 %v703_v45, %v559_v13  ;;  %vm1047_vm13 = vcmp.eq.s32.totalorder %v426_v56, %v2019_v58  ;;  %vm486_vm15 = vcmp.eq.s32.totalorder %v426_v56, %v1973_v33 }
 0x10c   : > { %1262 = vmatprep.subr.mxu0 %v1185_v25  ;;  %v1119_v57 = vsel %vm1047_vm13, %v2085_v37, 0.0  ;;  %v558_v19 = vsel %vm486_vm15, %v1954_v17, 0.0  ;;  %vm630_vm3 = vcmp.eq.s32.totalorder %v426_v56, %v1992_v46  ;;  %vm838_vm8 = vcmp.eq.s32.totalorder %v426_v56, %v2008_v52 }
 0x10d   : > { %v1184_v6 = vadd.f32 %v1120_v26, %v976_v29  ;;  %v975_v50 = vadd.f32 %v911_v28, %v767_v32  ;;  %v702_v8 = vsel %vm630_vm3, %v1998_v48, 0.0  ;;  %v910_v30 = vsel %vm838_vm8, %v2054_v55, 0.0 }
 0x10e   : > { %v766_v35 = vadd.f32 %v702_v8, %v558_v19  ;;  %vm1046_vm12 = vcmp.eq.s32.totalorder %v426_v56, %v2014_v54  ;;  %v425_v16 = vadd.s32 152, %v1814_v4  ;;  %v424_v38 = vadd.s32 144, %v1814_v4 }
 0x10f   : > { %1263 = vmatpush2.msra.mxu0 %v1184_v6  ;;  %v1183_v3 = vadd.f32 %v1119_v57, %v975_v50  ;;  %v1118_v61 = vsel %vm1046_vm12, %v2080_v34, 0.0  ;;  %v2713_v44 = vadd.s32 136, %v1814_v4  ;;  %v2716_v62 = vadd.s32 128, %v1814_v4 }
 0x110   : > { %v974_v14 = vadd.f32 %v910_v30, %v766_v35  ;;  %vm485_vm10 = vcmp.eq.s32.totalorder %v425_v16, %v1982_v40  ;;  %vm629_vm14 = vcmp.eq.s32.totalorder %v425_v16, %v1995_v47  ;;  %vm837_vm5 = vcmp.eq.s32.totalorder %v425_v16, %v2011_v53 }
 0x111   : > { %1264 = vmatprep.subr.mxu0 %v1183_v3  ;;  %v557_v9 = vsel %vm485_vm10, %v1985_v41, 0.0  ;;  %v701_v36 = vsel %vm629_vm14, %v2005_v51, 0.0  ;;  %v909_v63 = vsel %vm837_vm5, %v2065_v20, 0.0  ;;  %vm1045_vm9 = vcmp.eq.s32.totalorder %v425_v16, %v2019_v58  ;;  %v1206_v3 = vld [vmem:[%s1808_s20] sm:$0xff] }
 0x112   : > { %v1182_v18 = vadd.f32 %v1118_v61, %v974_v14  ;;  %v765_v0 = vadd.f32 %v701_v36, %v557_v9  ;;  %v1117_v4 = vsel %vm1045_vm9, %v2085_v37, 0.0  ;;  %vm484_vm7 = vcmp.eq.s32.totalorder %v425_v16, %v1973_v33 }
 0x113   : > { %v556_v22 = vsel %vm484_vm7, %v1954_v17, 0.0  ;;  %vm628_vm0 = vcmp.eq.s32.totalorder %v425_v16, %v1992_v46  ;;  %vm836_vm11 = vcmp.eq.s32.totalorder %v425_v16, %v2008_v52  ;;  %vm1044_vm1 = vcmp.eq.s32.totalorder %v425_v16, %v2014_v54 }
 0x114   : > { %1265 = vmatpush2.msra.mxu0 %v1182_v18  ;;  %v973_v1 = vadd.f32 %v909_v63, %v765_v0  ;;  %v700_v43 = vsel %vm628_vm0, %v1998_v48, 0.0  ;;  %v908_v7 = vsel %vm836_vm11, %v2054_v55, 0.0  ;;  %v1116_v12 = vsel %vm1044_vm1, %v2080_v34, 0.0 }
 0x115   : > { %v764_v39 = vadd.f32 %v700_v43, %v556_v22  ;;  %vm483_vm6 = vcmp.eq.s32.totalorder %v424_v38, %v1982_v40  ;;  %vm627_vm2 = vcmp.eq.s32.totalorder %v424_v38, %v1995_v47  ;;  %vm835_vm4 = vcmp.eq.s32.totalorder %v424_v38, %v2011_v53 }
 0x116   : > { %v1181_v10 = vadd.f32 %v1117_v4, %v973_v1  ;;  %v555_v59 = vsel %vm483_vm6, %v1985_v41, 0.0  ;;  %v699_v56 = vsel %vm627_vm2, %v2005_v51, 0.0  ;;  %v907_v5 = vsel %vm835_vm4, %v2065_v20, 0.0 }
 0x117   : > { %v972_v2 = vadd.f32 %v908_v7, %v764_v39  ;;  %v763_v15 = vadd.f32 %v699_v56, %v555_v59  ;;  %vm1043_vm13 = vcmp.eq.s32.totalorder %v424_v38, %v2019_v58  ;;  %vm482_vm15 = vcmp.eq.s32.totalorder %v424_v38, %v1973_v33 }
 0x118   : > { %1266 = vmatprep.subr.mxu0 %v1181_v10  ;;  %v1115_v11 = vsel %vm1043_vm13, %v2085_v37, 0.0  ;;  %v554_v21 = vsel %vm482_vm15, %v1954_v17, 0.0  ;;  %vm626_vm3 = vcmp.eq.s32.totalorder %v424_v38, %v1992_v46  ;;  %vm834_vm8 = vcmp.eq.s32.totalorder %v424_v38, %v2008_v52 }
 0x119   : > { %v1180_v42 = vadd.f32 %v1116_v12, %v972_v2  ;;  %v971_v24 = vadd.f32 %v907_v5, %v763_v15  ;;  %v698_v23 = vsel %vm626_vm3, %v1998_v48, 0.0  ;;  %v906_v49 = vsel %vm834_vm8, %v2054_v55, 0.0 }
 0x11a   : > { %v762_v60 = vadd.f32 %v698_v23, %v554_v21  ;;  %vm1042_vm12 = vcmp.eq.s32.totalorder %v424_v38, %v2014_v54  ;;  %vm481_vm10 = vcmp.eq.s32.totalorder %v2713_v44, %v1982_v40  ;;  %vm625_vm14 = vcmp.eq.s32.totalorder %v2713_v44, %v1995_v47 }
 0x11b   : > { %1267 = vmatpush2.msra.mxu0 %v1180_v42  ;;  %v1179_v31 = vadd.f32 %v1115_v11, %v971_v24  ;;  %v1114_v26 = vsel %vm1042_vm12, %v2080_v34, 0.0  ;;  %v553_v27 = vsel %vm481_vm10, %v1985_v41, 0.0  ;;  %v697_v25 = vsel %vm625_vm14, %v2005_v51, 0.0 }
 0x11c   : > { %v970_v13 = vadd.f32 %v906_v49, %v762_v60  ;;  %v761_v45 = vadd.f32 %v697_v25, %v553_v27  ;;  %vm833_vm5 = vcmp.eq.s32.totalorder %v2713_v44, %v2011_v53  ;;  %vm1041_vm9 = vcmp.eq.s32.totalorder %v2713_v44, %v2019_v58 }
 0x11d   : > { %1268 = vmatprep.subr.mxu0 %v1179_v31  ;;  %v905_v28 = vsel %vm833_vm5, %v2065_v20, 0.0  ;;  %v1113_v29 = vsel %vm1041_vm9, %v2085_v37, 0.0  ;;  %vm480_vm7 = vcmp.eq.s32.totalorder %v2713_v44, %v1973_v33  ;;  %vm624_vm0 = vcmp.eq.s32.totalorder %v2713_v44, %v1992_v46 }
 0x11e   : > { %v1178_v32 = vadd.f32 %v1114_v26, %v970_v13  ;;  %v969_v57 = vadd.f32 %v905_v28, %v761_v45  ;;  %v552_v19 = vsel %vm480_vm7, %v1954_v17, 0.0  ;;  %v696_v6 = vsel %vm624_vm0, %v1998_v48, 0.0 }
 0x11f   : > { %v760_v50 = vadd.f32 %v696_v6, %v552_v19  ;;  %vm832_vm11 = vcmp.eq.s32.totalorder %v2713_v44, %v2008_v52  ;;  %vm1040_vm1 = vcmp.eq.s32.totalorder %v2713_v44, %v2014_v54  ;;  %vm479_vm6 = vcmp.eq.s32.totalorder %v2716_v62, %v1982_v40 }
 0x120   : > { %1269 = vmatpush2.msra.mxu0 %v1178_v32  ;;  %v1177_v8 = vadd.f32 %v1113_v29, %v969_v57  ;;  %v904_v30 = vsel %vm832_vm11, %v2054_v55, 0.0  ;;  %v1112_v35 = vsel %vm1040_vm1, %v2080_v34, 0.0  ;;  %v551_v16 = vsel %vm479_vm6, %v1985_v41, 0.0 }
 0x121   : > { %v968_v38 = vadd.f32 %v904_v30, %v760_v50  ;;  %vm623_vm2 = vcmp.eq.s32.totalorder %v2716_v62, %v1995_v47  ;;  %vm831_vm4 = vcmp.eq.s32.totalorder %v2716_v62, %v2011_v53  ;;  %vm1039_vm13 = vcmp.eq.s32.totalorder %v2716_v62, %v2019_v58 }
 0x122   : > { %1270 = vmatprep.subr.mxu0 %v1177_v8  ;;  %v695_v40 = vsel %vm623_vm2, %v2005_v51, 0.0  ;;  %v903_v61 = vsel %vm831_vm4, %v2065_v20, 0.0  ;;  %v1111_v44 = vsel %vm1039_vm13, %v2085_v37, 0.0  ;;  %vm478_vm15 = vcmp.eq.s32.totalorder %v2716_v62, %v1973_v33 }
 0x123   : > { %v1176_v41 = vadd.f32 %v1112_v35, %v968_v38  ;;  %v759_v14 = vadd.f32 %v695_v40, %v551_v16  ;;  %v550_v47 = vsel %vm478_vm15, %v1954_v17, 0.0  ;;  %vm622_vm3 = vcmp.eq.s32.totalorder %v2716_v62, %v1992_v46 }
 0x124   : > { %v694_v53 = vsel %vm622_vm3, %v1998_v48, 0.0  ;;  %vm830_vm8 = vcmp.eq.s32.totalorder %v2716_v62, %v2008_v52  ;;  %vm1038_vm12 = vcmp.eq.s32.totalorder %v2716_v62, %v2014_v54  ;;  %v1208_v51 = vcombine.high %v1206_v3, %v1206_v3 }
 0x125   : > { %1271 = vmatpush2.msra.mxu0 %v1176_v41  ;;  %v967_v33 = vadd.f32 %v903_v61, %v759_v14  ;;  %v758_v58 = vadd.f32 %v694_v53, %v550_v47  ;;  %v902_v20 = vsel %vm830_vm8, %v2054_v55, 0.0  ;;  %v1110_v17 = vsel %vm1038_vm12, %v2080_v34, 0.0 }
 0x126   : > { %1274 = vmatprep.mubr.f32.mxu0 %v1208_v51 }
 0x127   : > { %v1175_v46 = vadd.f32 %v1111_v44, %v967_v33  ;;  %v966_v48 = vadd.f32 %v902_v20, %v758_v58 }
 0x129   : > { %1272 = vmatprep.subr.mxu0 %v1175_v46  ;;  %v1174_v52 = vadd.f32 %v1110_v17, %v966_v48 }
 0x12b   : > { %1273 = vmatpush2.msra.mxu0 %v1174_v52 }
 0x12c   : > { %1275 = vmatmul.mubr.f32.vlgmr.msra.gmra.mxu0 %v1206_v3 }
 0x1ec   : > { %v1276_v37 = vpop.f32.mrf.mxu0 }
 0x1ee   : > { %v1278_v54 = vpop.f32.mrf.mxu0 }
 0x1ef   : > { %v1283_v62 = vcombine.low %v1276_v37, %v1278_v54 }
 0x1f1   : > { %1285 = vst [vmem:[%s215_s26] sm:$0xff] %v1283_v62 }
 0x1f2   : > { %1594 = shalt.err (!%p1591_p6)
}
 0x1f3   : > { %s1595_s6 = scalar_lea.hbm %s1301_s3, 128  ;;  %s1599_s16 = scalar_lea.hbm %s2843_s2, 256 }
 0x1f4   : > { %p1596_p7 = scmp.ne.s32.totalorder %s1301_s3, %s1595_s6  ;;  %p1600_p4 = scmp.lt.s32.totalorder %s1301_s3, %s2843_s2 }
 0x1f5   : > { %p1601_p10 = scmp.lt.s32.totalorder %s1599_s16, %s1595_s6 }
 0x1f6   : > { %p1597_p1 = pnand %p1596_p7, %p1737_p9 }
 0x1f7   : > { %p1602_p8 = por %p1601_p10, %p1600_p4 }
 0x1f8   : > { %p1598_p2 = pneg %p1597_p1 }
 0x1fa   : > { %p1603_p0 = pnand %p1602_p8, %p1598_p2 }
 0x1fc   : > { %1606 = shalt.err (!%p1603_p0)
}
 0x1fd   : > { %1460 = dma.vmem_to_hbm [thread:$0]  (%p1737_p9), %s1304_s27, 128, %s1301_s3, %s1287_s7  }
 0x1fe PF: > { %s1315_s18 = sand.u32 1, %s1645_s9   ;;  %p2862_p3 = scmp.ge.s32.totalorder %s1665_s14, 2 }
 0x1ff   : > { %s1316_s20 = scalar_lea.sflag [#allocation4], %s1315_s18 }
 0x200   : > { %p1470_p13 = pnand %p2862_p3, %p1744_p11 }
 0x202   : > { %p1471_p5 = pneg %p1470_p13 }
 0x204   : > { %1640 = dma.done.wait (%p1471_p5), %s1316_s20, 128  }
 0x205   : > { %1642 = vsyncadd (%p1471_p5), %s1316_s20, 4294967168  ;;  %s21_s14 = sadd.s32 1, %s1665_s14   ;;  %s2863_s9 = smov %s1649_s10 }
 0x206   : > { %p18_p12 = scmp.ge.s32.totalorder %s21_s14, 4   ;;  %s2864_s10 = smov %s1653_s11 }
 0x207   : > { %s2865_s11 = smov %s1742_s23  ;;  %s2866_s12 = smov %s1661_s13 }
 0x208   : > { %s2867_s13 = smov %s2869_s17  ;;  %20 = sbr.rel (!%p18_p12) target bundleno = 8 (0x8), region = 86 }
 0x20d   :  { %1321 = vsyncpa [#allocation3], 1 }
 0x20e   :  { %1323 = vsyncpa [#allocation3 + $0x1], 1 }
 0x20f   :  { %1324 = vsyncpa [#allocation6], 1 }
 0x210   :  { %1326 = vsyncpa [#allocation6 + $0x1], 1 }
 0x211   :  { %1327 = vsyncpa [#allocation4], 1 }
 0x212   :  { %1329 = vsyncpa [#allocation4 + $0x1], 1 }

</bundles_post_ra>
